<compile_context>
chip_gen: v7x
topology: tpu7x:2x2x1
jax: 0.10.0
libtpu: 0.0.40
codegen_flags: <defaults>
</compile_context>

<pallas_src>
import jax
import jax.numpy as jnp
from jax.experimental import pallas as pl
from jax.experimental.pallas import tpu as pltpu


# ----------------------------------------------------------------------------
# Fused forward kernel (whole CharCNN per batch row, grid=(B,))
# ----------------------------------------------------------------------------
def _maxpool3(z, lp):
    """MaxPool1d(kernel=3, stride=3) over rows of z:(Lc, C) (floor semantics).

    pmax[j] = max(z[j], z[j+1], z[j+2]) via three static row-shifted slices,
    then rows 0,3,6,... are selected with a tiny 0/1 matmul.  Everything stays
    a live value (no scratch round trip, no strided loads, no reshapes).
    """
    Lc = z.shape[0]
    pmax = jnp.maximum(jnp.maximum(z[0:Lc - 2, :], z[1:Lc - 1, :]), z[2:Lc, :])
    rows = jax.lax.broadcasted_iota(jnp.int32, (lp, Lc - 2), 0)
    cols = jax.lax.broadcasted_iota(jnp.int32, (lp, Lc - 2), 1)
    sel = (cols == 3 * rows).astype(jnp.float32)          # (lp, Lc-2)
    return jnp.dot(sel, pmax, preferred_element_type=jnp.float32)


def _make_fused_kernel(l0, conv_meta):
    """conv_meta: list of (kernel_size K, pool?) per conv layer, in order."""
    n_conv = len(conv_meta)

    def kernel(x_ref, *refs):
        conv_refs = refs[:2 * n_conv]
        fc1_w, fc1_b, fc2_w, fc2_b, fc3_w, fc3_b, o_ref = refs[2 * n_conv:]

        y = x_ref[0]                                   # (L_pad, m) f32 one-hot
        L = l0                                         # true (unpadded) length
        for idx, (K, pool) in enumerate(conv_meta):
            w_ref = conv_refs[2 * idx]                 # (K*C_in, C_out) bf16
            b_ref = conv_refs[2 * idx + 1]             # (1, C_out) f32
            Lc = L - K + 1
            # conv1d as ONE MXU-dense unfolded matmul
            win = jnp.concatenate([y[k:k + Lc, :] for k in range(K)], axis=-1)
            z = jnp.dot(win.astype(jnp.bfloat16), w_ref[...],
                        preferred_element_type=jnp.float32)
            z = jnp.maximum(z + b_ref[...], 0.0)       # bias (+folded BN) + ReLU
            if pool:
                L = Lc // 3
                y = _maxpool3(z, L)
            else:
                L = Lc
                y = z

        # Flatten (L, C) channel-last, row-major; fc1_w rows were pre-permuted
        # so this matches PyTorch's x.view(B, -1) of the NCW tensor.
        flat = jnp.concatenate([y[l:l + 1, :] for l in range(L)], axis=-1)
        flat = flat.astype(jnp.bfloat16)               # (1, L*C)

        h = jnp.dot(flat, fc1_w[...], preferred_element_type=jnp.float32)
        h = jnp.maximum(h + fc1_b[...], 0.0)
        h = jnp.dot(h.astype(jnp.bfloat16), fc2_w[...],
                    preferred_element_type=jnp.float32)
        h = jnp.maximum(h + fc2_b[...], 0.0)
        logits = jnp.dot(h.astype(jnp.bfloat16), fc3_w[...],
                         preferred_element_type=jnp.float32)
        o_ref[0] = logits + fc3_b[...]                 # lane-dense (1, out_pad)

    return kernel


def charcnn_forward(tokens, P):
    """tokens: (B, l0) int32 in [0, m]. Returns (B, num_classes) f32 logits."""
    B, l0 = tokens.shape
    m = P["m"]
    num_classes = P["num_classes"]
    out_pad = P["fc3_w"].shape[1]

    # Embedding: rows 1..m identity, row 0 (padding_idx) -> zeros.
    x = jax.nn.one_hot(tokens - 1, m, dtype=jnp.float32)     # (B, l0, m)
    l_pad = ((l0 + 7) // 8) * 8                              # sublane-align rows
    if l_pad != l0:
        x = jnp.pad(x, ((0, 0), (0, l_pad - l0), (0, 0)))

    conv_args, conv_specs = [], []
    for (w, b) in P["convs"]:
        conv_args += [w, b]
        conv_specs += [pl.BlockSpec(w.shape, lambda i: (0, 0)),
                       pl.BlockSpec(b.shape, lambda i: (0, 0))]

    fc_args = [P["fc1_w"], P["fc1_b"], P["fc2_w"], P["fc2_b"],
               P["fc3_w"], P["fc3_b"]]
    fc_specs = [pl.BlockSpec(a.shape, lambda i: (0, 0)) for a in fc_args]

    out = pl.pallas_call(
        _make_fused_kernel(l0, P["conv_meta"]),
        out_shape=jax.ShapeDtypeStruct((B, 1, out_pad), jnp.float32),
        grid=(B,),
        in_specs=[pl.BlockSpec((1, l_pad, m), lambda i: (i, 0, 0))]
                 + conv_specs + fc_specs,
        out_specs=pl.BlockSpec((1, 1, out_pad), lambda i: (i, 0, 0)),
        compiler_params=pltpu.CompilerParams(
            dimension_semantics=("parallel",)),   # v7x: shard batch over 2 TCs
    )(x, *conv_args, *fc_args)
    return out[:, 0, :num_classes]


# ----------------------------------------------------------------------------
# Deterministic parameter construction (BN folded, weights unfolded + bf16)
# ----------------------------------------------------------------------------
def _xavier_normal(key, shape, fan_in, fan_out):
    std = (2.0 / (fan_in + fan_out)) ** 0.5
    return std * jax.random.normal(key, shape, dtype=jnp.float32)


def make_params(key, *, version, m, l0, C, hidden, num_classes):
    num_convs = {3: 0, 4: 1, 5: 2, 6: 3}[version]
    keys = iter(jax.random.split(key, 32))

    eps = 1e-5
    bn_scale = jnp.full((C,), 1.0 / (1.0 + eps) ** 0.5, jnp.float32)  # eval BN
    bn_shift = jnp.zeros((C,), jnp.float32)
    # TODO(synk): training-mode BatchNorm (batch statistics) and Dropout masks
    # are not reproduced; the forward uses eval/inference semantics.

    def conv_layer(K, c_in, c_out, *, bn):
        w = _xavier_normal(next(keys), (K, c_in, c_out), c_in * K, c_out * K)
        bound = 1.0 / (c_in * K) ** 0.5
        b = jax.random.uniform(next(keys), (c_out,), jnp.float32, -bound, bound)
        if bn:  # fold eval-mode BatchNorm into the conv weight/bias
            w = w * bn_scale
            b = b * bn_scale + bn_shift
        # layout for the in-kernel (Lc, K*C_in) @ (K*C_in, C_out) unfolded dot
        w_unf = w.reshape(K * c_in, c_out).astype(jnp.bfloat16)
        return w_unf, b.reshape(1, c_out)

    convs, conv_meta = [], []
    convs.append(conv_layer(7, m, C, bn=True)); conv_meta.append((7, True))    # block1
    convs.append(conv_layer(7, C, C, bn=True)); conv_meta.append((7, True))
    for _ in range(num_convs):                                                 # block2
        convs.append(conv_layer(3, C, C, bn=True)); conv_meta.append((3, False))
    convs.append(conv_layer(3, C, C, bn=False)); conv_meta.append((3, True))   # block3

    # PyTorch size bookkeeping
    size = ((l0 - 6) / 3 - 6) / 3
    self_size = int((size - 2 * num_convs - 2) / 3)
    fc_in = self_size * C

    fc1_w = _xavier_normal(next(keys), (fc_in, hidden), fc_in, hidden)
    # Fold PyTorch's NCW flatten (B, C, L) -> (B, C*L) into fc1's rows so the
    # kernel can flatten its channel-last (L, C) activation row-major.
    fc1_w = fc1_w.reshape(C, self_size, hidden).transpose(1, 0, 2).reshape(fc_in, hidden)
    fc2_w = _xavier_normal(next(keys), (hidden, hidden), hidden, hidden)
    fc3_w = _xavier_normal(next(keys), (hidden, num_classes), hidden, num_classes)

    out_pad = ((num_classes + 127) // 128) * 128           # lane-dense logits
    fc3_w = jnp.pad(fc3_w, ((0, 0), (0, out_pad - num_classes)))

    return {
        "m": m, "num_classes": num_classes,
        "conv_meta": conv_meta, "convs": convs,
        "fc1_w": fc1_w.astype(jnp.bfloat16), "fc1_b": jnp.zeros((1, hidden), jnp.float32),
        "fc2_w": fc2_w.astype(jnp.bfloat16), "fc2_b": jnp.zeros((1, hidden), jnp.float32),
        "fc3_w": fc3_w.astype(jnp.bfloat16), "fc3_b": jnp.zeros((1, out_pad), jnp.float32),
    }


if __name__ == "__main__":
    # Small config consistent with the module structure (version 4).
    version = 4
    B, m, l0 = 2, 16, 114            # tokens in [0, m], sequence length 114
    C, hidden, num_classes = 128, 128, 4

    key = jax.random.PRNGKey(0)
    kp, kx = jax.random.split(key)
    P = make_params(kp, version=version, m=m, l0=l0, C=C,
                    hidden=hidden, num_classes=num_classes)
    tokens = jax.random.randint(kx, (B, l0), 0, m + 1, dtype=jnp.int32)

    fwd = jax.jit(lambda t: charcnn_forward(t, P))
    out = jax.block_until_ready(fwd(tokens))
    assert out.shape == (B, num_classes), out.shape
    assert bool(jnp.all(jnp.isfinite(out)))
    print("KERNEL_OK")
</pallas_src>

<mosaic_0001>
module attributes {stable_mosaic.version = 11 : i64} {
  func.func @kernel(%arg0: i32, %arg1: memref<1x120x16xf32, #tpu.memory_space<vmem>>, %arg2: memref<112x128xbf16, #tpu.memory_space<vmem>>, %arg3: memref<1x128xf32, #tpu.memory_space<vmem>>, %arg4: memref<896x128xbf16, #tpu.memory_space<vmem>>, %arg5: memref<1x128xf32, #tpu.memory_space<vmem>>, %arg6: memref<384x128xbf16, #tpu.memory_space<vmem>>, %arg7: memref<1x128xf32, #tpu.memory_space<vmem>>, %arg8: memref<384x128xbf16, #tpu.memory_space<vmem>>, %arg9: memref<1x128xf32, #tpu.memory_space<vmem>>, %arg10: memref<256x128xbf16, #tpu.memory_space<vmem>>, %arg11: memref<1x128xf32, #tpu.memory_space<vmem>>, %arg12: memref<128x128xbf16, #tpu.memory_space<vmem>>, %arg13: memref<1x128xf32, #tpu.memory_space<vmem>>, %arg14: memref<128x128xbf16, #tpu.memory_space<vmem>>, %arg15: memref<1x128xf32, #tpu.memory_space<vmem>>, %arg16: memref<1x1x128xf32, #tpu.memory_space<vmem>>) attributes {dimension_semantics = [#tpu.dimension_semantics<parallel>], iteration_bounds = array<i64: 2>, scalar_prefetch = 0 : i64, scratch_operands = 0 : i64, tpu.core_type = #tpu.core_type<tc>, window_params = [{transform_indices = @transform_0, window_bounds = array<i64: 1, 120, 16>}, {pipeline_mode = #tpu.pipeline_mode<synchronous>, transform_indices = @transform_1, window_bounds = array<i64: 112, 128>}, {pipeline_mode = #tpu.pipeline_mode<synchronous>, transform_indices = @transform_2, window_bounds = array<i64: 1, 128>}, {pipeline_mode = #tpu.pipeline_mode<synchronous>, transform_indices = @transform_3, window_bounds = array<i64: 896, 128>}, {pipeline_mode = #tpu.pipeline_mode<synchronous>, transform_indices = @transform_4, window_bounds = array<i64: 1, 128>}, {pipeline_mode = #tpu.pipeline_mode<synchronous>, transform_indices = @transform_5, window_bounds = array<i64: 384, 128>}, {pipeline_mode = #tpu.pipeline_mode<synchronous>, transform_indices = @transform_6, window_bounds = array<i64: 1, 128>}, {pipeline_mode = #tpu.pipeline_mode<synchronous>, transform_indices = @transform_7, window_bounds = array<i64: 384, 128>}, {pipeline_mode = #tpu.pipeline_mode<synchronous>, transform_indices = @transform_8, window_bounds = array<i64: 1, 128>}, {pipeline_mode = #tpu.pipeline_mode<synchronous>, transform_indices = @transform_9, window_bounds = array<i64: 256, 128>}, {pipeline_mode = #tpu.pipeline_mode<synchronous>, transform_indices = @transform_10, window_bounds = array<i64: 1, 128>}, {pipeline_mode = #tpu.pipeline_mode<synchronous>, transform_indices = @transform_11, window_bounds = array<i64: 128, 128>}, {pipeline_mode = #tpu.pipeline_mode<synchronous>, transform_indices = @transform_12, window_bounds = array<i64: 1, 128>}, {pipeline_mode = #tpu.pipeline_mode<synchronous>, transform_indices = @transform_13, window_bounds = array<i64: 128, 128>}, {pipeline_mode = #tpu.pipeline_mode<synchronous>, transform_indices = @transform_14, window_bounds = array<i64: 1, 128>}, {transform_indices = @transform_15, window_bounds = array<i64: 1, 1, 128>}]} {
    %c0 = arith.constant 0 : index
    %c0_0 = arith.constant 0 : index
    %c0_1 = arith.constant 0 : index
    %0 = vector.load %arg1[%c0, %c0_0, %c0_1] : memref<1x120x16xf32, #tpu.memory_space<vmem>>, vector<1x120x16xf32>
    %1 = vector.shape_cast %0 : vector<1x120x16xf32> to vector<120x16xf32>
    %2 = vector.extract_strided_slice %1 {offsets = [0, 0], sizes = [108, 16], strides = [1, 1]} : vector<120x16xf32> to vector<108x16xf32>
    %3 = vector.extract_strided_slice %1 {offsets = [1, 0], sizes = [108, 16], strides = [1, 1]} : vector<120x16xf32> to vector<108x16xf32>
    %4 = vector.extract_strided_slice %1 {offsets = [2, 0], sizes = [108, 16], strides = [1, 1]} : vector<120x16xf32> to vector<108x16xf32>
    %5 = vector.extract_strided_slice %1 {offsets = [3, 0], sizes = [108, 16], strides = [1, 1]} : vector<120x16xf32> to vector<108x16xf32>
    %6 = vector.extract_strided_slice %1 {offsets = [4, 0], sizes = [108, 16], strides = [1, 1]} : vector<120x16xf32> to vector<108x16xf32>
    %7 = vector.extract_strided_slice %1 {offsets = [5, 0], sizes = [108, 16], strides = [1, 1]} : vector<120x16xf32> to vector<108x16xf32>
    %8 = vector.extract_strided_slice %1 {offsets = [6, 0], sizes = [108, 16], strides = [1, 1]} : vector<120x16xf32> to vector<108x16xf32>
    %9 = tpu.concatenate %2, %3, %4, %5, %6, %7, %8 in 1 : vector<108x16xf32>, vector<108x16xf32>, vector<108x16xf32>, vector<108x16xf32>, vector<108x16xf32>, vector<108x16xf32>, vector<108x16xf32> -> vector<108x112xf32>
    %10 = arith.truncf %9 : vector<108x112xf32> to vector<108x112xbf16>
    %c0_2 = arith.constant 0 : index
    %c0_3 = arith.constant 0 : index
    %11 = vector.load %arg2[%c0_2, %c0_3] : memref<112x128xbf16, #tpu.memory_space<vmem>>, vector<112x128xbf16>
    %cst = arith.constant dense<0.000000e+00> : vector<108x128xf32>
    %12 = tpu.matmul %10, %11, %cst {dimension_numbers = #tpu.dot_dimension_numbers<[1], [0], [0], [1], [0, 0, 1, 1], [], []>} : vector<108x112xbf16>, vector<112x128xbf16>, vector<108x128xf32> -> vector<108x128xf32>
    %c0_4 = arith.constant 0 : index
    %c0_5 = arith.constant 0 : index
    %13 = vector.load %arg3[%c0_4, %c0_5] : memref<1x128xf32, #tpu.memory_space<vmem>>, vector<1x128xf32>
    %14 = vector.broadcast %13 : vector<1x128xf32> to vector<108x128xf32>
    %15 = arith.addf %12, %14 : vector<108x128xf32>
    %cst_6 = arith.constant 0.000000e+00 : f32
    %16 = vector.broadcast %cst_6 : f32 to vector<108x128xf32>
    %17 = arith.maximumf %15, %16 : vector<108x128xf32>
    %18 = vector.extract_strided_slice %17 {offsets = [0, 0], sizes = [106, 128], strides = [1, 1]} : vector<108x128xf32> to vector<106x128xf32>
    %19 = vector.extract_strided_slice %17 {offsets = [1, 0], sizes = [106, 128], strides = [1, 1]} : vector<108x128xf32> to vector<106x128xf32>
    %20 = arith.maximumf %18, %19 : vector<106x128xf32>
    %21 = vector.extract_strided_slice %17 {offsets = [2, 0], sizes = [106, 128], strides = [1, 1]} : vector<108x128xf32> to vector<106x128xf32>
    %22 = arith.maximumf %20, %21 : vector<106x128xf32>
    %23 = tpu.iota {dimensions = array<i32: 0>} : vector<36x106xi32>
    %24 = tpu.iota {dimensions = array<i32: 1>} : vector<36x106xi32>
    %c3_i32 = arith.constant 3 : i32
    %25 = vector.broadcast %c3_i32 : i32 to vector<36x106xi32>
    %26 = arith.muli %25, %23 : vector<36x106xi32>
    %27 = arith.cmpi eq, %24, %26 : vector<36x106xi32>
    %28 = arith.extui %27 : vector<36x106xi1> to vector<36x106xi32>
    %29 = arith.sitofp %28 : vector<36x106xi32> to vector<36x106xf32>
    %cst_7 = arith.constant dense<0.000000e+00> : vector<36x128xf32>
    %30 = tpu.matmul %29, %22, %cst_7 {dimension_numbers = #tpu.dot_dimension_numbers<[1], [0], [0], [1], [0, 0, 1, 1], [], []>} : vector<36x106xf32>, vector<106x128xf32>, vector<36x128xf32> -> vector<36x128xf32>
    %31 = vector.extract_strided_slice %30 {offsets = [0, 0], sizes = [30, 128], strides = [1, 1]} : vector<36x128xf32> to vector<30x128xf32>
    %32 = vector.extract_strided_slice %30 {offsets = [1, 0], sizes = [30, 128], strides = [1, 1]} : vector<36x128xf32> to vector<30x128xf32>
    %33 = vector.extract_strided_slice %30 {offsets = [2, 0], sizes = [30, 128], strides = [1, 1]} : vector<36x128xf32> to vector<30x128xf32>
    %34 = vector.extract_strided_slice %30 {offsets = [3, 0], sizes = [30, 128], strides = [1, 1]} : vector<36x128xf32> to vector<30x128xf32>
    %35 = vector.extract_strided_slice %30 {offsets = [4, 0], sizes = [30, 128], strides = [1, 1]} : vector<36x128xf32> to vector<30x128xf32>
    %36 = vector.extract_strided_slice %30 {offsets = [5, 0], sizes = [30, 128], strides = [1, 1]} : vector<36x128xf32> to vector<30x128xf32>
    %37 = vector.extract_strided_slice %30 {offsets = [6, 0], sizes = [30, 128], strides = [1, 1]} : vector<36x128xf32> to vector<30x128xf32>
    %38 = tpu.concatenate %31, %32, %33, %34, %35, %36, %37 in 1 : vector<30x128xf32>, vector<30x128xf32>, vector<30x128xf32>, vector<30x128xf32>, vector<30x128xf32>, vector<30x128xf32>, vector<30x128xf32> -> vector<30x896xf32>
    %39 = arith.truncf %38 : vector<30x896xf32> to vector<30x896xbf16>
    %c0_8 = arith.constant 0 : index
    %c0_9 = arith.constant 0 : index
    %40 = vector.load %arg4[%c0_8, %c0_9] : memref<896x128xbf16, #tpu.memory_space<vmem>>, vector<896x128xbf16>
    %cst_10 = arith.constant dense<0.000000e+00> : vector<30x128xf32>
    %41 = tpu.matmul %39, %40, %cst_10 {dimension_numbers = #tpu.dot_dimension_numbers<[1], [0], [0], [1], [0, 0, 1, 1], [], []>} : vector<30x896xbf16>, vector<896x128xbf16>, vector<30x128xf32> -> vector<30x128xf32>
    %c0_11 = arith.constant 0 : index
    %c0_12 = arith.constant 0 : index
    %42 = vector.load %arg5[%c0_11, %c0_12] : memref<1x128xf32, #tpu.memory_space<vmem>>, vector<1x128xf32>
    %43 = vector.broadcast %42 : vector<1x128xf32> to vector<30x128xf32>
    %44 = arith.addf %41, %43 : vector<30x128xf32>
    %cst_13 = arith.constant 0.000000e+00 : f32
    %45 = vector.broadcast %cst_13 : f32 to vector<30x128xf32>
    %46 = arith.maximumf %44, %45 : vector<30x128xf32>
    %47 = vector.extract_strided_slice %46 {offsets = [0, 0], sizes = [28, 128], strides = [1, 1]} : vector<30x128xf32> to vector<28x128xf32>
    %48 = vector.extract_strided_slice %46 {offsets = [1, 0], sizes = [28, 128], strides = [1, 1]} : vector<30x128xf32> to vector<28x128xf32>
    %49 = arith.maximumf %47, %48 : vector<28x128xf32>
    %50 = vector.extract_strided_slice %46 {offsets = [2, 0], sizes = [28, 128], strides = [1, 1]} : vector<30x128xf32> to vector<28x128xf32>
    %51 = arith.maximumf %49, %50 : vector<28x128xf32>
    %52 = tpu.iota {dimensions = array<i32: 0>} : vector<10x28xi32>
    %53 = tpu.iota {dimensions = array<i32: 1>} : vector<10x28xi32>
    %c3_i32_14 = arith.constant 3 : i32
    %54 = vector.broadcast %c3_i32_14 : i32 to vector<10x28xi32>
    %55 = arith.muli %54, %52 : vector<10x28xi32>
    %56 = arith.cmpi eq, %53, %55 : vector<10x28xi32>
    %57 = arith.extui %56 : vector<10x28xi1> to vector<10x28xi32>
    %58 = arith.sitofp %57 : vector<10x28xi32> to vector<10x28xf32>
    %cst_15 = arith.constant dense<0.000000e+00> : vector<10x128xf32>
    %59 = tpu.matmul %58, %51, %cst_15 {dimension_numbers = #tpu.dot_dimension_numbers<[1], [0], [0], [1], [0, 0, 1, 1], [], []>} : vector<10x28xf32>, vector<28x128xf32>, vector<10x128xf32> -> vector<10x128xf32>
    %60 = vector.extract_strided_slice %59 {offsets = [0, 0], sizes = [8, 128], strides = [1, 1]} : vector<10x128xf32> to vector<8x128xf32>
    %61 = vector.extract_strided_slice %59 {offsets = [1, 0], sizes = [8, 128], strides = [1, 1]} : vector<10x128xf32> to vector<8x128xf32>
    %62 = vector.extract_strided_slice %59 {offsets = [2, 0], sizes = [8, 128], strides = [1, 1]} : vector<10x128xf32> to vector<8x128xf32>
    %63 = tpu.concatenate %60, %61, %62 in 1 : vector<8x128xf32>, vector<8x128xf32>, vector<8x128xf32> -> vector<8x384xf32>
    %64 = arith.truncf %63 : vector<8x384xf32> to vector<8x384xbf16>
    %c0_16 = arith.constant 0 : index
    %c0_17 = arith.constant 0 : index
    %65 = vector.load %arg6[%c0_16, %c0_17] : memref<384x128xbf16, #tpu.memory_space<vmem>>, vector<384x128xbf16>
    %cst_18 = arith.constant dense<0.000000e+00> : vector<8x128xf32>
    %66 = tpu.matmul %64, %65, %cst_18 {dimension_numbers = #tpu.dot_dimension_numbers<[1], [0], [0], [1], [0, 0, 1, 1], [], []>} : vector<8x384xbf16>, vector<384x128xbf16>, vector<8x128xf32> -> vector<8x128xf32>
    %c0_19 = arith.constant 0 : index
    %c0_20 = arith.constant 0 : index
    %67 = vector.load %arg7[%c0_19, %c0_20] : memref<1x128xf32, #tpu.memory_space<vmem>>, vector<1x128xf32>
    %68 = vector.broadcast %67 : vector<1x128xf32> to vector<8x128xf32>
    %69 = arith.addf %66, %68 : vector<8x128xf32>
    %cst_21 = arith.constant 0.000000e+00 : f32
    %70 = vector.broadcast %cst_21 : f32 to vector<8x128xf32>
    %71 = arith.maximumf %69, %70 : vector<8x128xf32>
    %72 = vector.extract_strided_slice %71 {offsets = [0, 0], sizes = [6, 128], strides = [1, 1]} : vector<8x128xf32> to vector<6x128xf32>
    %73 = vector.extract_strided_slice %71 {offsets = [1, 0], sizes = [6, 128], strides = [1, 1]} : vector<8x128xf32> to vector<6x128xf32>
    %74 = vector.extract_strided_slice %71 {offsets = [2, 0], sizes = [6, 128], strides = [1, 1]} : vector<8x128xf32> to vector<6x128xf32>
    %75 = tpu.concatenate %72, %73, %74 in 1 : vector<6x128xf32>, vector<6x128xf32>, vector<6x128xf32> -> vector<6x384xf32>
    %76 = arith.truncf %75 : vector<6x384xf32> to vector<6x384xbf16>
    %c0_22 = arith.constant 0 : index
    %c0_23 = arith.constant 0 : index
    %77 = vector.load %arg8[%c0_22, %c0_23] : memref<384x128xbf16, #tpu.memory_space<vmem>>, vector<384x128xbf16>
    %cst_24 = arith.constant dense<0.000000e+00> : vector<6x128xf32>
    %78 = tpu.matmul %76, %77, %cst_24 {dimension_numbers = #tpu.dot_dimension_numbers<[1], [0], [0], [1], [0, 0, 1, 1], [], []>} : vector<6x384xbf16>, vector<384x128xbf16>, vector<6x128xf32> -> vector<6x128xf32>
    %c0_25 = arith.constant 0 : index
    %c0_26 = arith.constant 0 : index
    %79 = vector.load %arg9[%c0_25, %c0_26] : memref<1x128xf32, #tpu.memory_space<vmem>>, vector<1x128xf32>
    %80 = vector.broadcast %79 : vector<1x128xf32> to vector<6x128xf32>
    %81 = arith.addf %78, %80 : vector<6x128xf32>
    %cst_27 = arith.constant 0.000000e+00 : f32
    %82 = vector.broadcast %cst_27 : f32 to vector<6x128xf32>
    %83 = arith.maximumf %81, %82 : vector<6x128xf32>
    %84 = vector.extract_strided_slice %83 {offsets = [0, 0], sizes = [4, 128], strides = [1, 1]} : vector<6x128xf32> to vector<4x128xf32>
    %85 = vector.extract_strided_slice %83 {offsets = [1, 0], sizes = [4, 128], strides = [1, 1]} : vector<6x128xf32> to vector<4x128xf32>
    %86 = arith.maximumf %84, %85 : vector<4x128xf32>
    %87 = vector.extract_strided_slice %83 {offsets = [2, 0], sizes = [4, 128], strides = [1, 1]} : vector<6x128xf32> to vector<4x128xf32>
    %88 = arith.maximumf %86, %87 : vector<4x128xf32>
    %89 = tpu.iota {dimensions = array<i32: 0>} : vector<2x4xi32>
    %90 = tpu.iota {dimensions = array<i32: 1>} : vector<2x4xi32>
    %c3_i32_28 = arith.constant 3 : i32
    %91 = vector.broadcast %c3_i32_28 : i32 to vector<2x4xi32>
    %92 = arith.muli %91, %89 : vector<2x4xi32>
    %93 = arith.cmpi eq, %90, %92 : vector<2x4xi32>
    %94 = arith.extui %93 : vector<2x4xi1> to vector<2x4xi32>
    %95 = arith.sitofp %94 : vector<2x4xi32> to vector<2x4xf32>
    %cst_29 = arith.constant dense<0.000000e+00> : vector<2x128xf32>
    %96 = tpu.matmul %95, %88, %cst_29 {dimension_numbers = #tpu.dot_dimension_numbers<[1], [0], [0], [1], [0, 0, 1, 1], [], []>} : vector<2x4xf32>, vector<4x128xf32>, vector<2x128xf32> -> vector<2x128xf32>
    %97 = vector.extract_strided_slice %96 {offsets = [0, 0], sizes = [1, 128], strides = [1, 1]} : vector<2x128xf32> to vector<1x128xf32>
    %98 = vector.extract_strided_slice %96 {offsets = [1, 0], sizes = [1, 128], strides = [1, 1]} : vector<2x128xf32> to vector<1x128xf32>
    %99 = tpu.concatenate %97, %98 in 1 : vector<1x128xf32>, vector<1x128xf32> -> vector<1x256xf32>
    %100 = arith.truncf %99 : vector<1x256xf32> to vector<1x256xbf16>
    %c0_30 = arith.constant 0 : index
    %c0_31 = arith.constant 0 : index
    %101 = vector.load %arg10[%c0_30, %c0_31] : memref<256x128xbf16, #tpu.memory_space<vmem>>, vector<256x128xbf16>
    %cst_32 = arith.constant dense<0.000000e+00> : vector<1x128xf32>
    %102 = tpu.matmul %100, %101, %cst_32 {dimension_numbers = #tpu.dot_dimension_numbers<[1], [0], [0], [1], [0, 0, 1, 1], [], []>} : vector<1x256xbf16>, vector<256x128xbf16>, vector<1x128xf32> -> vector<1x128xf32>
    %c0_33 = arith.constant 0 : index
    %c0_34 = arith.constant 0 : index
    %103 = vector.load %arg11[%c0_33, %c0_34] : memref<1x128xf32, #tpu.memory_space<vmem>>, vector<1x128xf32>
    %104 = arith.addf %102, %103 : vector<1x128xf32>
    %cst_35 = arith.constant 0.000000e+00 : f32
    %105 = vector.broadcast %cst_35 : f32 to vector<1x128xf32>
    %106 = arith.maximumf %104, %105 : vector<1x128xf32>
    %107 = arith.truncf %106 : vector<1x128xf32> to vector<1x128xbf16>
    %c0_36 = arith.constant 0 : index
    %c0_37 = arith.constant 0 : index
    %108 = vector.load %arg12[%c0_36, %c0_37] : memref<128x128xbf16, #tpu.memory_space<vmem>>, vector<128x128xbf16>
    %cst_38 = arith.constant dense<0.000000e+00> : vector<1x128xf32>
    %109 = tpu.matmul %107, %108, %cst_38 {dimension_numbers = #tpu.dot_dimension_numbers<[1], [0], [0], [1], [0, 0, 1, 1], [], []>} : vector<1x128xbf16>, vector<128x128xbf16>, vector<1x128xf32> -> vector<1x128xf32>
    %c0_39 = arith.constant 0 : index
    %c0_40 = arith.constant 0 : index
    %110 = vector.load %arg13[%c0_39, %c0_40] : memref<1x128xf32, #tpu.memory_space<vmem>>, vector<1x128xf32>
    %111 = arith.addf %109, %110 : vector<1x128xf32>
    %cst_41 = arith.constant 0.000000e+00 : f32
    %112 = vector.broadcast %cst_41 : f32 to vector<1x128xf32>
    %113 = arith.maximumf %111, %112 : vector<1x128xf32>
    %114 = arith.truncf %113 : vector<1x128xf32> to vector<1x128xbf16>
    %c0_42 = arith.constant 0 : index
    %c0_43 = arith.constant 0 : index
    %115 = vector.load %arg14[%c0_42, %c0_43] : memref<128x128xbf16, #tpu.memory_space<vmem>>, vector<128x128xbf16>
    %cst_44 = arith.constant dense<0.000000e+00> : vector<1x128xf32>
    %116 = tpu.matmul %114, %115, %cst_44 {dimension_numbers = #tpu.dot_dimension_numbers<[1], [0], [0], [1], [0, 0, 1, 1], [], []>} : vector<1x128xbf16>, vector<128x128xbf16>, vector<1x128xf32> -> vector<1x128xf32>
    %c0_45 = arith.constant 0 : index
    %c0_46 = arith.constant 0 : index
    %117 = vector.load %arg15[%c0_45, %c0_46] : memref<1x128xf32, #tpu.memory_space<vmem>>, vector<1x128xf32>
    %118 = arith.addf %116, %117 : vector<1x128xf32>
    %c0_47 = arith.constant 0 : index
    %c0_48 = arith.constant 0 : index
    %c0_49 = arith.constant 0 : index
    %119 = vector.load %arg16[%c0_47, %c0_48, %c0_49] : memref<1x1x128xf32, #tpu.memory_space<vmem>>, vector<1x1x128xf32>
    %120 = vector.shape_cast %119 : vector<1x1x128xf32> to vector<1x128xf32>
    %121 = vector.shape_cast %118 : vector<1x128xf32> to vector<1x1x128xf32>
    tpu.vector_store %arg16[%c0_47, %c0_48, %c0_49], %121 {strides = array<i32>} : memref<1x1x128xf32, #tpu.memory_space<vmem>>, vector<1x1x128xf32>,
    return
  }
  func.func @transform_0(%arg0: i32) -> (i32, i32, i32) {
    %c0_i32 = arith.constant 0 : i32
    %c0_i32_0 = arith.constant 0 : i32
    %c0_i32_1 = arith.constant 0 : i32
    return %arg0, %c0_i32, %c0_i32_0 : i32, i32, i32
  }
  func.func @transform_1(%arg0: i32) -> (i32, i32) {
    %c0_i32 = arith.constant 0 : i32
    %c0_i32_0 = arith.constant 0 : i32
    %c0_i32_1 = arith.constant 0 : i32
    return %c0_i32, %c0_i32_0 : i32, i32
  }
  func.func @transform_2(%arg0: i32) -> (i32, i32) {
    %c0_i32 = arith.constant 0 : i32
    %c0_i32_0 = arith.constant 0 : i32
    %c0_i32_1 = arith.constant 0 : i32
    return %c0_i32, %c0_i32_0 : i32, i32
  }
  func.func @transform_3(%arg0: i32) -> (i32, i32) {
    %c0_i32 = arith.constant 0 : i32
    %c0_i32_0 = arith.constant 0 : i32
    %c0_i32_1 = arith.constant 0 : i32
    return %c0_i32, %c0_i32_0 : i32, i32
  }
  func.func @transform_4(%arg0: i32) -> (i32, i32) {
    %c0_i32 = arith.constant 0 : i32
    %c0_i32_0 = arith.constant 0 : i32
    %c0_i32_1 = arith.constant 0 : i32
    return %c0_i32, %c0_i32_0 : i32, i32
  }
  func.func @transform_5(%arg0: i32) -> (i32, i32) {
    %c0_i32 = arith.constant 0 : i32
    %c0_i32_0 = arith.constant 0 : i32
    %c0_i32_1 = arith.constant 0 : i32
    return %c0_i32, %c0_i32_0 : i32, i32
  }
  func.func @transform_6(%arg0: i32) -> (i32, i32) {
    %c0_i32 = arith.constant 0 : i32
    %c0_i32_0 = arith.constant 0 : i32
    %c0_i32_1 = arith.constant 0 : i32
    return %c0_i32, %c0_i32_0 : i32, i32
  }
  func.func @transform_7(%arg0: i32) -> (i32, i32) {
    %c0_i32 = arith.constant 0 : i32
    %c0_i32_0 = arith.constant 0 : i32
    %c0_i32_1 = arith.constant 0 : i32
    return %c0_i32, %c0_i32_0 : i32, i32
  }
  func.func @transform_8(%arg0: i32) -> (i32, i32) {
    %c0_i32 = arith.constant 0 : i32
    %c0_i32_0 = arith.constant 0 : i32
    %c0_i32_1 = arith.constant 0 : i32
    return %c0_i32, %c0_i32_0 : i32, i32
  }
  func.func @transform_9(%arg0: i32) -> (i32, i32) {
    %c0_i32 = arith.constant 0 : i32
    %c0_i32_0 = arith.constant 0 : i32
    %c0_i32_1 = arith.constant 0 : i32
    return %c0_i32, %c0_i32_0 : i32, i32
  }
  func.func @transform_10(%arg0: i32) -> (i32, i32) {
    %c0_i32 = arith.constant 0 : i32
    %c0_i32_0 = arith.constant 0 : i32
    %c0_i32_1 = arith.constant 0 : i32
    return %c0_i32, %c0_i32_0 : i32, i32
  }
  func.func @transform_11(%arg0: i32) -> (i32, i32) {
    %c0_i32 = arith.constant 0 : i32
    %c0_i32_0 = arith.constant 0 : i32
    %c0_i32_1 = arith.constant 0 : i32
    return %c0_i32, %c0_i32_0 : i32, i32
  }
  func.func @transform_12(%arg0: i32) -> (i32, i32) {
    %c0_i32 = arith.constant 0 : i32
    %c0_i32_0 = arith.constant 0 : i32
    %c0_i32_1 = arith.constant 0 : i32
    return %c0_i32, %c0_i32_0 : i32, i32
  }
  func.func @transform_13(%arg0: i32) -> (i32, i32) {
    %c0_i32 = arith.constant 0 : i32
    %c0_i32_0 = arith.constant 0 : i32
    %c0_i32_1 = arith.constant 0 : i32
    return %c0_i32, %c0_i32_0 : i32, i32
  }
  func.func @transform_14(%arg0: i32) -> (i32, i32) {
    %c0_i32 = arith.constant 0 : i32
    %c0_i32_0 = arith.constant 0 : i32
    %c0_i32_1 = arith.constant 0 : i32
    return %c0_i32, %c0_i32_0 : i32, i32
  }
  func.func @transform_15(%arg0: i32) -> (i32, i32, i32) {
    %c0_i32 = arith.constant 0 : i32
    %c0_i32_0 = arith.constant 0 : i32
    %c0_i32_1 = arith.constant 0 : i32
    return %arg0, %c0_i32, %c0_i32_0 : i32, i32, i32
  }
}

</mosaic_0001>

<bundles_post_ra>
// kernel: _lambda_.1
= control target key start
LH: loop header
LB: loop body
LE: loop exit
PB: predicated region body
PF: predicated region fallthrough
CT: control target
= control target key end

     0   :  { %s6283_s0 = inlined_call_operand.vmem [shape: f32[2,120,16], index: 0, kind: input, shape index: {}]   ;;  %s6284_s1 = inlined_call_operand.vmem [shape: bf16[112,128], index: 1, kind: input, shape index: {}]   ;;  %s6285_s2 = inlined_call_operand.vmem [shape: f32[1,128], index: 2, kind: input, shape index: {}]   ;;  %s6286_s3 = inlined_call_operand.hbm [shape: bf16[896,128], index: 3, kind: input, shape index: {}]   ;;  %s6287_s4 = inlined_call_operand.hbm [shape: f32[1,128], index: 4, kind: input, shape index: {}]   ;;  %s6288_s5 = inlined_call_operand.vmem [shape: bf16[384,128], index: 5, kind: input, shape index: {}]   ;;  %s6289_s6 = inlined_call_operand.hbm [shape: f32[1,128], index: 6, kind: input, shape index: {}]   ;;  %s6290_s7 = inlined_call_operand.vmem [shape: bf16[384,128], index: 7, kind: input, shape index: {}]   ;;  %s6291_s8 = inlined_call_operand.hbm [shape: f32[1,128], index: 8, kind: input, shape index: {}]   ;;  %s6292_s9 = inlined_call_operand.hbm [shape: bf16[256,128], index: 9, kind: input, shape index: {}]   ;;  %s6293_s10 = inlined_call_operand.vmem [shape: f32[1,128], index: 10, kind: input, shape index: {}, may-alias: {10,12,14}]   ;;  %s6294_s11 = inlined_call_operand.hbm [shape: bf16[128,128], index: 11, kind: input, shape index: {}]   ;;  %s6295_s12 = inlined_call_operand.vmem [shape: f32[1,128], index: 12, kind: input, shape index: {}, may-alias: {10,12,14}]   ;;  %s6296_s13 = inlined_call_operand.hbm [shape: bf16[128,128], index: 13, kind: input, shape index: {}]   ;;  %s6297_s14 = inlined_call_operand.vmem [shape: f32[1,128], index: 14, kind: input, shape index: {}, may-alias: {10,12,14}]   ;;  %s6298_s15 = inlined_call_operand.hbm [shape: f32[2,1,128], index: 15, kind: output, shape index: {}]  }
   0x1   :  { %6312 = sst [smem:[#allocation28_spill]] %s6287_s4 }
   0x2   :  { %6313 = sst [smem:[#allocation29_spill]] %s6291_s8 }
   0x3   :  { %6314 = sst [smem:[#allocation30_spill]] %s6295_s12 }
   0x4   :  { %6315 = sst [smem:[#allocation31_spill]] %s6297_s14 }
   0x5   :  { %6316 = sst [smem:[#allocation32_spill]] %s6298_s15 }
   0x6   :  { %20 = vsyncpa [#allocation3], 0 }
   0x7   :  { %21 = vsyncpa [#allocation6], 0 }
   0x8   :  { %22 = vsyncpa [#allocation9], 0 }
   0x9   :  { %23 = vsyncpa [#allocation12], 0 }
   0xa   :  { %24 = vsyncpa [#allocation4], 0 }
   0xb   :  { %26 = vsyncpa [#allocation4 + $0x1], 0  ;;  %s5172_s18 = smov 0   ;;  %s5174_s19 = smov 0  }
   0xc   :  { %s5176_s20 = smov 0   ;;  %s5178_s21 = smov 0  }
   0xd LB: > { %6317 = sst [smem:[#allocation20_spill]] %s5058_s18  ;;  %s5193_s22 = sadd.s32 4294967295, %s5070_s21   ;;  %s5070_s21 = sphi %s5178_s21, %s6351_s21   ;;  %s5066_s20 = sphi %s5176_s20, %s6354_s20   ;;  %s5062_s19 = sphi %s5174_s19, %s6353_s19   ;;  %s5058_s18 = sphi %s5172_s18, %s6352_s18  }
   0xe   : > { %6318 = sst [smem:[#allocation21_spill]] %s5062_s19  ;;  %s3644_s23 = sadd.s32 4294967294, %s5070_s21  }
   0xf   : > { %6319 = sst [smem:[#allocation22_spill]] %s5066_s20  ;;  %s5197_s24 = sadd.s32 1, %s5070_s21  }
  0x10   : > { %6320 = sst [smem:[#allocation23_spill]] %s5070_s21  ;;  %s359_s25 = sadd.s32 1, %s5066_s20 }
  0x11   : > { %6321 = sst [smem:[#allocation24_spill]] %s5197_s24  ;;  %s356_s26 = ssub.s32 %s5070_s21, %s5197_s24 }
  0x12   : > { %p369_p0 = scmp.ne.s32.totalorder %s5066_s20, %s5062_s19  ;;  %p357_p1 = scmp.eq.s32.totalorder %s356_s26, 0 }
  0x13   : > { %p370_p2 = scmp.eq.s32.totalorder %s5193_s22, 1  ;;  %p375_p3 = scmp.ne.s32.totalorder %s5062_s19, %s5058_s18 }
  0x14   : > { %p376_p4 = scmp.eq.s32.totalorder %s3644_s23, 1  ;;  %p3645_p7 = scmp.ge.s32.totalorder %s5070_s21, 1 }
  0x15   : > { %s5208_s27 = scalar_select %p357_p1, %s5066_s20, %s359_s25  }
  0x16   : > { %p5210_p5 = por %p370_p2, %p369_p0  ;;  %p5214_p6 = por %p376_p4, %p375_p3 }
  0x17   : > { %6322 = sst [smem:[#allocation25_spill]] %s5208_s27  ;;  %p383_p8 = scmp.lt.s32.totalorder %s5070_s21, 3 }
  0x18   : > { %s6323_s28 = scalar_select %p5210_p5, 1, 0 }
  0x19   : > { %s6325_s29 = scalar_select %p5214_p6, 1, 0 }
  0x1a   : > { %6324 = sst [smem:[#allocation26_spill]] %s6323_s28  ;;  %p6306_p9 = scmp.eq.s32.totalorder %s5193_s22, 0 }
  0x1b   : > { %6326 = sst [smem:[#allocation27_spill]] %s6325_s29  ;;  %p5221_p10 = pnand %p3645_p7, %p383_p8 }
  0x1c   : > { %s5072_s16 = smov [#allocation5]   ;;  %s5073_s23 = smov [#allocation8]  }
  0x1d   : > { %s6327_s30 = scalar_select %p5221_p10, 1, 0 }
  0x1e   : > { %s415_s17 = sshll.u32 %s5072_s16, 4  ;;  %p4337_p11 = pneg %p5221_p10  ;;  %s416_s17 = int_to_ptr.vmem [resolvable:$true] %s415_s17 }
  0x1f   : > { %s443_s25 = sshll.u32 %s5073_s23, 4  ;;  %s5074_s27 = smov [#allocation11]   ;;  %s5233_s25 = int_to_ptr.vmem [resolvable:$true] %s443_s25 }
  0x20   : > { %p5229_p12 = pnand %p6306_p9, %p4337_p11  ;;  %s5235_s20 = sshll.u32 %s5074_s27, 4  ;;  %s470_s20 = int_to_ptr.vmem [resolvable:$true] %s5235_s20 }
  0x21   : > { %s6329_s4 = sld [smem:[#allocation28_spill]] }
  0x22   : > { %p5245_p0 = pneg %p5229_p12 }
  0x27   : > { %s4796_s16 = scalar_lea.hbm %s6329_s4, 16 }
  0x28   : > { %p4797_p13 = scmp.ne.s32.totalorder %s6329_s4, %s4796_s16  ;;  %p4803_p3 = scmp.lt.u32.totalorder %s4796_s16, %s6329_s4 }
  0x2a   : > { %p4799_p1 = pnand %p5245_p0, %p4797_p13 }
  0x2c   : > { %p4800_p2 = pneg %p4799_p1 }
  0x2e   : > { %p4805_p4 = pnand %p4803_p3, %p4800_p2 }
  0x30   : > { %4808 = shalt.err (!%p4805_p4)
}
  0x31   : > { %s4809_s24 = scalar_lea.vmem %s416_s17, 16  ;;  %s4816_s18 = scalar_lea.vmem %s416_s17, 32 }
  0x32   : > { %p4810_p7 = scmp.ne.s32.totalorder %s416_s17, %s4809_s24  ;;  %p4817_p9 = scmp.lt.s32.totalorder %s416_s17, %s416_s17 }
  0x33   : > { %p4818_p6 = scmp.lt.s32.totalorder %s4816_s18, %s4809_s24 }
  0x34   : > { %p4812_p8 = pnand %p4810_p7, %p5245_p0 }
  0x35   : > { %p4819_p5 = por %p4818_p6, %p4817_p9 }
  0x36   : > { %p4813_p11 = pneg %p4812_p8 }
  0x38   : > { %p4820_p10 = pnand %p4819_p5, %p4813_p11 }
  0x3a   : > { %4823 = shalt.err (!%p4820_p10)
}
  0x3b   : > { %4343 = dma.hbm_to_vmem [thread:$0]  (!%p5229_p12), %s6329_s4, 16, %s416_s17, [#allocation6]  }
  0x3c   : > { %s6331_s8 = sld [smem:[#allocation29_spill]] }
  0x42   : > { %s4824_s27 = scalar_lea.hbm %s6331_s8, 16 }
  0x43   : > { %p4825_p13 = scmp.ne.s32.totalorder %s6331_s8, %s4824_s27  ;;  %p4831_p5 = scmp.lt.u32.totalorder %s4824_s27, %s6331_s8 }
  0x45   : > { %p4827_p1 = pnand %p4825_p13, %p5245_p0 }
  0x47   : > { %p4828_p6 = pneg %p4827_p1 }
  0x49   : > { %p4833_p9 = pnand %p4831_p5, %p4828_p6 }
  0x4b   : > { %4836 = shalt.err (!%p4833_p9)
}
  0x4c   : > { %s4837_s17 = scalar_lea.vmem %s5233_s25, 16  ;;  %s4844_s14 = scalar_lea.vmem %s5233_s25, 32 }
  0x4d   : > { %p4838_p10 = scmp.ne.s32.totalorder %s5233_s25, %s4837_s17  ;;  %p4845_p4 = scmp.lt.s32.totalorder %s5233_s25, %s5233_s25 }
  0x4e   : > { %p4846_p7 = scmp.lt.s32.totalorder %s4844_s14, %s4837_s17 }
  0x4f   : > { %p4840_p2 = pnand %p4838_p10, %p5245_p0 }
  0x50   : > { %p4847_p8 = por %p4846_p7, %p4845_p4 }
  0x51   : > { %p4841_p3 = pneg %p4840_p2 }
  0x53   : > { %p4848_p11 = pnand %p4847_p8, %p4841_p3 }
  0x55   : > { %4851 = shalt.err (!%p4848_p11)
}
  0x56   : > { %4349 = dma.hbm_to_vmem [thread:$0]  (!%p5229_p12), %s6331_s8, 16, %s5233_s25, [#allocation9]  }
  0x57   : > { %s4852_s16 = scalar_lea.hbm %s6294_s11, 1024 }
  0x58   : > { %p4853_p13 = scmp.ne.s32.totalorder %s6294_s11, %s4852_s16  ;;  %p4859_p5 = scmp.lt.u32.totalorder %s4852_s16, %s6294_s11 }
  0x5a   : > { %p4855_p1 = pnand %p4853_p13, %p5245_p0 }
  0x5c   : > { %p4856_p6 = pneg %p4855_p1 }
  0x5e   : > { %p4861_p9 = pnand %p4859_p5, %p4856_p6 }
  0x60   : > { %4864 = shalt.err (!%p4861_p9)
}
  0x61   : > { %s4865_s14 = scalar_lea.vmem %s470_s20, 1024  ;;  %p4873_p4 = scmp.lt.s32.totalorder %s470_s20, %s470_s20 }
  0x62   : > { %p4866_p10 = scmp.ne.s32.totalorder %s470_s20, %s4865_s14  ;;  %p4874_p7 = scmp.lt.s32.totalorder %s4865_s14, %s4865_s14 }
  0x64   : > { %p4868_p2 = pnand %p4866_p10, %p5245_p0  ;;  %p4875_p8 = por %p4874_p7, %p4873_p4 }
  0x66   : > { %p4869_p3 = pneg %p4868_p2 }
  0x68   : > { %p4876_p11 = pnand %p4875_p8, %p4869_p3 }
  0x6a   : > { %4879 = shalt.err (!%p4876_p11)
}
  0x6b   : > { %s5075_s25 = smov 64   ;;  %s5076_s28 = smov 4  }
  0x6c   : > { %4355 = dma.hbm_to_vmem [thread:$0]  (!%p5229_p12), %s6294_s11, 1024, %s470_s20, [#allocation12], %s5075_s25, %s5075_s25, %s5076_s28  }
  0x6d   : > { %s5077_s15 = smov [#allocation2]   ;;  %s5078_s27 = smov [#allocation7]  }
  0x6e   : > { %s401_s16 = sshll.u32 %s5077_s15, 4  ;;  %s429_s24 = sshll.u32 %s5078_s27, 4  ;;  %s402_s16 = int_to_ptr.vmem [resolvable:$true] %s401_s16  ;;  %s430_s24 = int_to_ptr.vmem [resolvable:$true] %s429_s24 }
  0x6f   : > { %s4880_s14 = scalar_lea.hbm %s6286_s3, 7168 }
  0x70   : > { %p4881_p13 = scmp.ne.s32.totalorder %s6286_s3, %s4880_s14  ;;  %p4887_p5 = scmp.lt.u32.totalorder %s4880_s14, %s6286_s3 }
  0x72   : > { %p4883_p1 = pnand %p4881_p13, %p5245_p0 }
  0x74   : > { %p4884_p6 = pneg %p4883_p1 }
  0x76   : > { %p4889_p9 = pnand %p4887_p5, %p4884_p6 }
  0x78   : > { %4892 = shalt.err (!%p4889_p9)
}
  0x79   : > { %s4893_s20 = scalar_lea.vmem %s402_s16, 7168  ;;  %p4901_p4 = scmp.lt.s32.totalorder %s402_s16, %s402_s16 }
  0x7a   : > { %p4894_p10 = scmp.ne.s32.totalorder %s402_s16, %s4893_s20  ;;  %p4902_p7 = scmp.lt.s32.totalorder %s4893_s20, %s4893_s20 }
  0x7c   : > { %p4896_p2 = pnand %p4894_p10, %p5245_p0  ;;  %p4903_p8 = por %p4902_p7, %p4901_p4 }
  0x7e   : > { %p4897_p3 = pneg %p4896_p2 }
  0x80   : > { %p4904_p11 = pnand %p4903_p8, %p4897_p3 }
  0x82   : > { %4907 = shalt.err (!%p4904_p11)
}
  0x83   : > { %4340 = dma.hbm_to_vmem [thread:$0]  (!%p5229_p12), %s6286_s3, 7168, %s402_s16, [#allocation3], %s5075_s25, %s5075_s25, %s5076_s28  }
  0x84   : > { %s4908_s21 = scalar_lea.hbm %s6289_s6, 16 }
  0x85   : > { %p4909_p13 = scmp.ne.s32.totalorder %s6289_s6, %s4908_s21  ;;  %p4915_p5 = scmp.lt.u32.totalorder %s4908_s21, %s6289_s6 }
  0x87   : > { %p4911_p1 = pnand %p4909_p13, %p5245_p0 }
  0x89   : > { %p4912_p6 = pneg %p4911_p1 }
  0x8b   : > { %p4917_p9 = pnand %p4915_p5, %p4912_p6 }
  0x8d   : > { %4920 = shalt.err (!%p4917_p9)
}
  0x8e   : > { %s4921_s17 = scalar_lea.vmem %s430_s24, 16  ;;  %s4928_s16 = scalar_lea.vmem %s430_s24, 32 }
  0x8f   : > { %p4922_p10 = scmp.ne.s32.totalorder %s430_s24, %s4921_s17  ;;  %p4929_p4 = scmp.lt.s32.totalorder %s430_s24, %s430_s24 }
  0x90   : > { %p4930_p7 = scmp.lt.s32.totalorder %s4928_s16, %s4921_s17 }
  0x91   : > { %p4924_p2 = pnand %p4922_p10, %p5245_p0 }
  0x92   : > { %p4931_p8 = por %p4930_p7, %p4929_p4 }
  0x93   : > { %p4925_p3 = pneg %p4924_p2 }
  0x95   : > { %p4932_p11 = pnand %p4931_p8, %p4925_p3 }
  0x97   : > { %4935 = shalt.err (!%p4932_p11)
}
  0x98   : > { %4346 = dma.hbm_to_vmem [thread:$0]  (!%p5229_p12), %s6289_s6, 16, %s430_s24, [#allocation6]  }
  0x99   : > { %s5079_s4 = smov [#allocation10]   ;;  %s5080_s12 = smov [#allocation13]  }
  0x9a   : > { %s453_s8 = sshll.u32 %s5079_s4, 4  ;;  %s485_s19 = sshll.u32 %s5080_s12, 4  ;;  %s454_s8 = int_to_ptr.vmem [resolvable:$true] %s453_s8  ;;  %s486_s19 = int_to_ptr.vmem [resolvable:$true] %s485_s19 }
  0x9b   : > { %s4936_s15 = scalar_lea.hbm %s6292_s9, 2048 }
  0x9c   : > { %p4937_p13 = scmp.ne.s32.totalorder %s6292_s9, %s4936_s15  ;;  %p4943_p5 = scmp.lt.u32.totalorder %s4936_s15, %s6292_s9 }
  0x9e   : > { %p4939_p1 = pnand %p4937_p13, %p5245_p0 }
  0xa0   : > { %p4940_p6 = pneg %p4939_p1 }
  0xa2   : > { %p4945_p9 = pnand %p4943_p5, %p4940_p6 }
  0xa4   : > { %4948 = shalt.err (!%p4945_p9)
}
  0xa5   : > { %s4949_s24 = scalar_lea.vmem %s454_s8, 2048  ;;  %p4957_p4 = scmp.lt.s32.totalorder %s454_s8, %s454_s8 }
  0xa6   : > { %p4950_p10 = scmp.ne.s32.totalorder %s454_s8, %s4949_s24  ;;  %p4958_p7 = scmp.lt.s32.totalorder %s4949_s24, %s4949_s24 }
  0xa8   : > { %p4952_p2 = pnand %p4950_p10, %p5245_p0  ;;  %p4959_p8 = por %p4958_p7, %p4957_p4 }
  0xaa   : > { %p4953_p3 = pneg %p4952_p2 }
  0xac   : > { %p4960_p11 = pnand %p4959_p8, %p4953_p3 }
  0xae   : > { %4963 = shalt.err (!%p4960_p11)
}
  0xaf   : > { %4352 = dma.hbm_to_vmem [thread:$0]  (!%p5229_p12), %s6292_s9, 2048, %s454_s8, [#allocation9], %s5075_s25, %s5075_s25, %s5076_s28  }
  0xb0   : > { %s4964_s21 = scalar_lea.hbm %s6296_s13, 1024 }
  0xb1   : > { %p4965_p13 = scmp.ne.s32.totalorder %s6296_s13, %s4964_s21  ;;  %p4971_p5 = scmp.lt.u32.totalorder %s4964_s21, %s6296_s13 }
  0xb3   : > { %p4967_p1 = pnand %p4965_p13, %p5245_p0 }
  0xb5   : > { %p4968_p6 = pneg %p4967_p1 }
  0xb7   : > { %p4973_p9 = pnand %p4971_p5, %p4968_p6 }
  0xb9   : > { %4976 = shalt.err (!%p4973_p9)
}
  0xba   : > { %s4977_s17 = scalar_lea.vmem %s486_s19, 1024  ;;  %p4985_p4 = scmp.lt.s32.totalorder %s486_s19, %s486_s19 }
  0xbb   : > { %p4978_p10 = scmp.ne.s32.totalorder %s486_s19, %s4977_s17  ;;  %p4986_p7 = scmp.lt.s32.totalorder %s4977_s17, %s4977_s17 }
  0xbd   : > { %p4980_p2 = pnand %p4978_p10, %p5245_p0  ;;  %p4987_p8 = por %p4986_p7, %p4985_p4 }
  0xbf   : > { %p4981_p3 = pneg %p4980_p2 }
  0xc1   : > { %p4988_p11 = pnand %p4987_p8, %p4981_p3 }
  0xc3   : > { %4991 = shalt.err (!%p4988_p11)
}
  0xc4   : > { %4358 = dma.hbm_to_vmem [thread:$0]  (!%p5229_p12), %s6296_s13, 1024, %s486_s19, [#allocation12], %s5075_s25, %s5075_s25, %s5076_s28  }
  0xc5   : > { %p6332_p13 = scmp.ne.s32.totalorder %s6327_s30, 0 }
  0xc6   : > { %p6333_p0 = scmp.eq.s32.totalorder (!%p6332_p13), %s5193_s22, 0 }
  0xc7   : > { %512 = sbr.rel (%p6332_p13) target bundleno = 2745 (0xab9), region = 80 }
  0xce   : > { %5037 = dma.done.wait (%p6333_p0), [#allocation3], 7168   ;;  %p6334_p1 = pmov %p6333_p0 }
  0xcf   : > { %p6335_p6 = pmov %p6333_p0 }
  0xd0   : > { %5039 = vsyncadd (%p6334_p1), [#allocation3], 4294960128 }
  0xd1   : > { %5041 = dma.done.wait (%p6335_p6), [#allocation6], 32   ;;  %p6336_p5 = pmov %p6333_p0 }
  0xd2   : > { %p6337_p9 = pmov %p6333_p0 }
  0xd3   : > { %5043 = vsyncadd (%p6336_p5), [#allocation6], 4294967264 }
  0xd4   : > { %5045 = dma.done.wait (%p6337_p9), [#allocation9], 2064   ;;  %p6338_p12 = pmov %p6333_p0 }
  0xd5   : > { %p6339_p10 = pmov %p6333_p0 }
  0xd6   : > { %5047 = vsyncadd (%p6338_p12), [#allocation9], 4294965232 }
  0xd7   : > { %5049 = dma.done.wait (%p6339_p10), [#allocation12], 2048   ;;  %p6340_p2 = pmov %p6333_p0 }
  0xd8   : > { %p583_p3 = scmp.lt.s32.totalorder %s5193_s22, 1  ;;  %v5081_v0 = vmov 0.0   ;;  %vm618_vm0 = vcmask 1046528   ;;  %vm758_vm1 = vcmask 1044480   ;;  %vm688_vm2 = vcmask 1045504   ;;  %s5082_s19 = smov 16  }
  0xd9   : > { %5051 = vsyncadd (%p6340_p2), [#allocation12], 4294965248  ;;  %4073 = vmatprep.subr.bf16.mxu0 %v5081_v0  ;;  %vm828_vm3 = vcmask 1043456   ;;  %vm899_vm4 = vcmask 1042432   ;;  %vm971_vm5 = vcmask 1041408   ;;  %v4639_v30 = vld [vmem:[%s6284_s1] sm:$0xff]  }
  0xda   : > { %s584_s30 = scalar_select %p583_p3, %s5193_s22, 1  ;;  %4074 = vmatpush3.bf16.msra.mxu0 %v4639_v30  ;;  %v4640_v39 = vld [vmem:[%s6284_s1 + $0x8] sm:$0xff]   ;;  %v4641_v52 = vld [vmem:[%s6284_s1 + $0x10] sm:$0xff]   ;;  %vm5088_vm6 = vmmov 0   ;;  %vm1043_vm7 = vcmask 130048   ;;  %vm1058_vm8 = vcmask 261120  }
  0xdb   : > { %s5083_s20 = smov 48   ;;  %4075 = vmatprep.subr.bf16.mxu0 %v5081_v0  ;;  %s5084_s21 = smov 32   ;;  %4087 = vmatprep.mubr.msk.bf16.mxu0 %vm5088_vm6, %v5081_v0  ;;  %vm1073_vm9 = vcmask 392192   ;;  %vm1088_vm10 = vcmask 523264   ;;  %vm1103_vm11 = vcmask 654336   ;;  %vm1118_vm12 = vcmask 785408  }
  0xdc   : > { %s4306_s26 = smul.u32 120, %s584_s30  ;;  %s5085_s29 = smov 64   ;;  %4143 = vmatprep.mubr.msk.f32.mxu1 %vm5088_vm6, %v5081_v0  ;;  %vm1203_vm13 = vcmask 916480   ;;  %vm5090_vm14 = vmmov 1  }
  0xdd   : > { %s5086_s18 = smov 80   ;;  %s5087_s17 = smov 96   ;;  %vm4294_vm15 = vmpackc.low %vm971_vm5, %vm5090_vm14 }
  0xde   : > { %s5412_s28 = scalar_lea.vmem %s6283_s0, %s4306_s26  ;;  %4076 = vmatpush3.bf16.msra.mxu0 %v4640_v39  ;;  %v4645_v39 = vld [vmem:[%s6284_s1 + $0x30] sm:$0xff]   ;;  %s6342_s27 = sld [smem:[#allocation30_spill]] }
  0xdf   : > { %v589_v1 = vld [vmem:[%s5412_s28] sm:$0xff]  ;;  %v590_v2 = vld [vmem:[%s5412_s28 + $0x8] sm:$0xff]  ;;  %v5417_v3 = vld [vmem:[%s5412_s28 + $0x10] sm:$0xff]  ;;  %4077 = vmatprep.subr.bf16.mxu0 %v5081_v0  ;;  %s6343_s16 = sld [smem:[#allocation31_spill]]  ;;  %s3833_s26 = sshll.u32 %s5193_s22, 4 }
  0xe0   : > { %v619_v4 = vrot.slane %v589_v1, 1  ;;  %v620_v5 = vrot.slane %v590_v2, 1  ;;  %v622_v6 = vrot.slane %v5417_v3, 1  ;;  %v759_v7 = vrot.slane %v589_v1, 3  ;;  %v5430_v24 = vld [vmem:[%s5412_s28 + $0x18] sm:$0xff]  ;;  %v5433_v25 = vld [vmem:[%s5412_s28 + $0x20] sm:$0xff] }
  0xe1   : > { %v760_v8 = vrot.slane %v590_v2, 3  ;;  %v762_v9 = vrot.slane %v5417_v3, 3  ;;  %v689_v10 = vrot.slane %v589_v1, 2  ;;  %v690_v11 = vrot.slane %v590_v2, 2  ;;  %v5471_v59 = vld [vmem:[%s5412_s28 + $0x28] sm:$0xff]  ;;  %s6344_s30 = sld [smem:[#allocation26_spill]] }
  0xe2   : > { %v621_v12 = vsel %vm618_vm0, %v619_v4, %v620_v5  ;;  %v623_v13 = vsel %vm618_vm0, %v620_v5, %v622_v6  ;;  %v692_v14 = vrot.slane %v5417_v3, 2  ;;  %v829_v15 = vrot.slane %v589_v1, 4  ;;  %4078 = vmatpush3.bf16.msra.mxu0 %v4641_v52  ;;  %s5091_s4 = smov [#allocation14]  }
  0xe3   : > { %v4429_v16 = vpack.i.bf16 %v623_v13, %v621_v12  ;;  %v761_v17 = vsel %vm758_vm1, %v759_v7, %v760_v8  ;;  %v763_v18 = vsel %vm758_vm1, %v760_v8, %v762_v9  ;;  %v691_v19 = vsel %vm688_vm2, %v689_v10, %v690_v11  ;;  %4079 = vmatprep.subr.bf16.mxu0 %v5081_v0  ;;  %s4996_s12 = sshll.u32 %s5091_s4, 4  ;;  %s4997_s12 = int_to_ptr.vmem [resolvable:$false] %s4996_s12 }
  0xe4   : > { %v4439_v20 = vpack.i.bf16 %v763_v18, %v761_v17  ;;  %v693_v21 = vsel %vm688_vm2, %v690_v11, %v692_v14  ;;  %v830_v22 = vrot.slane %v590_v2, 4  ;;  %v832_v23 = vrot.slane %v5417_v3, 4  ;;  %v4643_v18 = vld [vmem:[%s6284_s1 + $0x20] sm:$0xff]  }
  0xe5   : > { %4430 = vrot.lane.b32.xlu0 %v4429_v16, %s5082_s19  ;;  %v4434_v26 = vpack.i.bf16 %v693_v21, %v691_v19  ;;  %v900_v27 = vrot.slane %v589_v1, 5  ;;  %v901_v28 = vrot.slane %v590_v2, 5  ;;  %v903_v29 = vrot.slane %v5417_v3, 5 }
  0xe6   : > { %4440 = vrot.lane.b32.xlu1 %v4439_v20, %s5083_s20  ;;  %v831_v31 = vsel %vm828_vm3, %v829_v15, %v830_v22  ;;  %v833_v32 = vsel %vm828_vm3, %v830_v22, %v832_v23  ;;  %v972_v33 = vrot.slane %v589_v1, 6  ;;  %v973_v34 = vrot.slane %v590_v2, 6  ;;  %v5482_v1 = vld [vmem:[%s5412_s28 + $0x30] sm:$0xff] }
  0xe7   : > { %v4444_v35 = vpack.i.bf16 %v833_v32, %v831_v31  ;;  %v902_v36 = vsel %vm899_vm4, %v900_v27, %v901_v28  ;;  %v904_v37 = vsel %vm899_vm4, %v901_v28, %v903_v29  ;;  %v975_v38 = vrot.slane %v5417_v3, 6  ;;  %v5527_v31 = vld [vmem:[%s5412_s28 + $0x40] sm:$0xff]  ;;  %v4644_v32 = vld [vmem:[%s6284_s1 + $0x28] sm:$0xff]   ;;  %p6346_p7 = scmp.ne.s32.totalorder %s6344_s30, 0 }
  0xe8   : > { %v4449_v40 = vpack.i.bf16 %v904_v37, %v902_v36  ;;  %v974_v41 = vsel %vm971_vm5, %v972_v33, %v973_v34  ;;  %v624_v42 = vrot.slane %v5430_v24, 1  ;;  %v626_v43 = vrot.slane %v5433_v25, 1 }
  0xe9   : > { %4435 = vrot.lane.b32.xlu0 %v4434_v26, %s5084_s21  ;;  %v976_v44 = vsel %vm971_vm5, %v973_v34, %v975_v38  ;;  %v694_v45 = vrot.slane %v5430_v24, 2  ;;  %v696_v46 = vrot.slane %v5433_v25, 2  ;;  %v764_v47 = vrot.slane %v5430_v24, 3  ;;  %v5517_v26 = vld [vmem:[%s5412_s28 + $0x38] sm:$0xff] }
  0xea   : > { %4445 = vrot.lane.b32.xlu1 %v4444_v35, %s5085_s29  ;;  %v4454_v48 = vpack.i.bf16 %v976_v44, %v974_v41  ;;  %v625_v49 = vsel %vm618_vm0, %v622_v6, %v624_v42  ;;  %v627_v50 = vsel %vm618_vm0, %v624_v42, %v626_v43  ;;  %v766_v51 = vrot.slane %v5433_v25, 3  ;;  %v4642_v6 = vld [vmem:[%s6284_s1 + $0x18] sm:$0xff]  }
  0xeb   : > { %v695_v53 = vsel %vm688_vm2, %v692_v14, %v694_v45  ;;  %v697_v54 = vsel %vm688_vm2, %v694_v45, %v696_v46  ;;  %v4459_v55 = vpack.i.bf16 %v627_v50, %v625_v49  ;;  %v765_v56 = vsel %vm758_vm1, %v762_v9, %v764_v47  ;;  %4080 = vmatpush3.bf16.msra.mxu0 %v4642_v6 }
  0xec   : > { %v834_v57 = vrot.slane %v5430_v24, 4  ;;  %v836_v58 = vrot.slane %v5433_v25, 4  ;;  %v767_v60 = vsel %vm758_vm1, %v764_v47, %v766_v51  ;;  %v905_v61 = vrot.slane %v5430_v24, 5  ;;  %4081 = vmatprep.subr.bf16.mxu0 %v5081_v0 }
  0xed   : > { %4450 = vrot.lane.b32.xlu0 %v4449_v40, %s5086_s18  ;;  %v907_v62 = vrot.slane %v5433_v25, 5  ;;  %v977_v63 = vrot.slane %v5430_v24, 6  ;;  %v4464_v2 = vpack.i.bf16 %v697_v54, %v695_v53  ;;  %v979_v5 = vrot.slane %v5433_v25, 6 }
  0xee   : > { %4455 = vrot.lane.b32.xlu1 %v4454_v48, %s5087_s17  ;;  %v835_v3 = vsel %vm828_vm3, %v832_v23, %v834_v57  ;;  %v837_v4 = vsel %vm828_vm3, %v834_v57, %v836_v58  ;;  %v4469_v7 = vpack.i.bf16 %v767_v60, %v765_v56  ;;  %v628_v9 = vrot.slane %v5471_v59, 1  ;;  %v5553_v48 = vld [vmem:[%s5412_s28 + $0x48] sm:$0xff] }
  0xef   : > { %v4474_v8 = vpack.i.bf16 %v837_v4, %v835_v3  ;;  %v906_v10 = vsel %vm899_vm4, %v903_v29, %v905_v61  ;;  %v908_v11 = vsel %vm899_vm4, %v905_v61, %v907_v62  ;;  %v978_v12 = vsel %vm971_vm5, %v975_v38, %v977_v63  ;;  %4082 = vmatpush3.bf16.msra.mxu0 %v4643_v18 }
  0xf0   : > { %v630_v13 = vrot.slane %v5482_v1, 1  ;;  %v980_v14 = vsel %vm971_vm5, %v977_v63, %v979_v5  ;;  %v698_v15 = vrot.slane %v5471_v59, 2  ;;  %v700_v16 = vrot.slane %v5482_v1, 2  ;;  %4083 = vmatprep.subr.bf16.mxu0 %v5081_v0 }
  0xf1   : > { %4460 = vrot.lane.b32.xlu0 %v4459_v55, %s5082_s19  ;;  %v768_v17 = vrot.slane %v5471_v59, 3  ;;  %v4479_v19 = vpack.i.bf16 %v908_v11, %v906_v10  ;;  %v629_v20 = vsel %vm618_vm0, %v626_v43, %v628_v9  ;;  %v4484_v21 = vpack.i.bf16 %v980_v14, %v978_v12 }
  0xf2   : > { %4465 = vrot.lane.b32.xlu1 %v4464_v2, %s5084_s21  ;;  %v631_v22 = vsel %vm618_vm0, %v628_v9, %v630_v13  ;;  %v770_v23 = vrot.slane %v5482_v1, 3  ;;  %v838_v24 = vrot.slane %v5471_v59, 4  ;;  %v699_v27 = vsel %vm688_vm2, %v696_v46, %v698_v15 }
  0xf3   : > { %v701_v28 = vsel %vm688_vm2, %v698_v15, %v700_v16  ;;  %v840_v29 = vrot.slane %v5482_v1, 4  ;;  %v909_v30 = vrot.slane %v5471_v59, 5  ;;  %v911_v33 = vrot.slane %v5482_v1, 5  ;;  %4084 = vmatpush3.bf16.msra.mxu0 %v4644_v32 }
  0xf4   : > { %v981_v34 = vrot.slane %v5471_v59, 6  ;;  %v4489_v35 = vpack.i.bf16 %v631_v22, %v629_v20  ;;  %v4494_v36 = vpack.i.bf16 %v701_v28, %v699_v27  ;;  %v769_v37 = vsel %vm758_vm1, %v766_v51, %v768_v17  ;;  %v5558_v51 = vld [vmem:[%s5412_s28 + $0x50] sm:$0xff]  ;;  %4085 = vmatprep.subr.bf16.mxu0 %v5081_v0 }
  0xf5   : > { %4470 = vrot.lane.b32.xlu0 %v4469_v7, %s5083_s20  ;;  %v771_v38 = vsel %vm758_vm1, %v768_v17, %v770_v23  ;;  %v839_v40 = vsel %vm828_vm3, %v836_v58, %v838_v24  ;;  %v841_v41 = vsel %vm828_vm3, %v838_v24, %v840_v29  ;;  %v983_v42 = vrot.slane %v5482_v1, 6 }
  0xf6   : > { %4475 = vrot.lane.b32.xlu1 %v4474_v8, %s5085_s29  ;;  %v632_v43 = vrot.slane %v5517_v26, 1  ;;  %v634_v44 = vrot.slane %v5527_v31, 1  ;;  %v702_v45 = vrot.slane %v5517_v26, 2  ;;  %v704_v46 = vrot.slane %v5527_v31, 2 }
  0xf7   : > { %v772_v47 = vrot.slane %v5517_v26, 3  ;;  %v774_v49 = vrot.slane %v5527_v31, 3  ;;  %v842_v50 = vrot.slane %v5517_v26, 4  ;;  %v4499_v52 = vpack.i.bf16 %v771_v38, %v769_v37  ;;  %4086 = vmatpush3.bf16.msra.mxu0 %v4645_v39  ;;  %v5636_v38 = vld [vmem:[%s5412_s28 + $0x68] sm:$0xff] }
  0xf8   : > { %v4504_v53 = vpack.i.bf16 %v841_v41, %v839_v40  ;;  %v910_v54 = vsel %vm899_vm4, %v907_v62, %v909_v30  ;;  %v912_v55 = vsel %vm899_vm4, %v909_v30, %v911_v33  ;;  %v982_v56 = vsel %vm971_vm5, %v979_v5, %v981_v34 }
  0xf9   : > { %4480 = vrot.lane.b32.xlu0 %v4479_v19, %s5086_s18  ;;  %v984_v57 = vsel %vm971_vm5, %v981_v34, %v983_v42  ;;  %v633_v58 = vsel %vm618_vm0, %v630_v13, %v632_v43  ;;  %v635_v59 = vsel %vm618_vm0, %v632_v43, %v634_v44  ;;  %v844_v60 = vrot.slane %v5527_v31, 4 }
  0xfa   : > { %4485 = vrot.lane.b32.xlu1 %v4484_v21, %s5087_s17  ;;  %v913_v61 = vrot.slane %v5517_v26, 5  ;;  %v915_v62 = vrot.slane %v5527_v31, 5  ;;  %v985_v63 = vrot.slane %v5517_v26, 6  ;;  %v987_v25 = vrot.slane %v5527_v31, 6  ;;  %v5612_v21 = vld [vmem:[%s5412_s28 + $0x60] sm:$0xff] }
  0xfb   : > { %v636_v2 = vrot.slane %v5553_v48, 1  ;;  %v4509_v3 = vpack.i.bf16 %v912_v55, %v910_v54  ;;  %v638_v4 = vrot.slane %v5558_v51, 1  ;;  %v706_v5 = vrot.slane %v5553_v48, 2 }
  0xfc   : > { %v4514_v6 = vpack.i.bf16 %v984_v57, %v982_v56  ;;  %v703_v7 = vsel %vm688_vm2, %v700_v16, %v702_v45  ;;  %v4519_v8 = vpack.i.bf16 %v635_v59, %v633_v58  ;;  %v705_v9 = vsel %vm688_vm2, %v702_v45, %v704_v46  ;;  %v5604_v16 = vld [vmem:[%s5412_s28 + $0x58] sm:$0xff]  ;;  %v5661_v56 = vld [vmem:[%s5412_s28 + $0x70] sm:$0xff] }
  0xfd   : > { %4490 = vrot.lane.b32.xlu0 %v4489_v35, %s5082_s19  ;;  %v773_v10 = vsel %vm758_vm1, %v770_v23, %v772_v47  ;;  %v775_v11 = vsel %vm758_vm1, %v772_v47, %v774_v49  ;;  %v843_v12 = vsel %vm828_vm3, %v840_v29, %v842_v50  ;;  %v845_v13 = vsel %vm828_vm3, %v842_v50, %v844_v60 }
  0xfe   : > { %4495 = vrot.lane.b32.xlu1 %v4494_v36, %s5084_s21  ;;  %v708_v14 = vrot.slane %v5558_v51, 2  ;;  %v776_v15 = vrot.slane %v5553_v48, 3  ;;  %v778_v17 = vrot.slane %v5558_v51, 3  ;;  %v846_v18 = vrot.slane %v5553_v48, 4 }
  0xff   : > { %v848_v19 = vrot.slane %v5558_v51, 4  ;;  %v917_v20 = vrot.slane %v5553_v48, 5  ;;  %v4524_v22 = vpack.i.bf16 %v705_v9, %v703_v7  ;;  %v919_v23 = vrot.slane %v5558_v51, 5 }
 0x100   : > { %v989_v24 = vrot.slane %v5553_v48, 6  ;;  %v4529_v26 = vpack.i.bf16 %v775_v11, %v773_v10  ;;  %v4534_v27 = vpack.i.bf16 %v845_v13, %v843_v12  ;;  %v914_v28 = vsel %vm899_vm4, %v911_v33, %v913_v61 }
 0x101   : > { %4500 = vrot.lane.b32.xlu0 %v4499_v52, %s5083_s20  ;;  %v916_v29 = vsel %vm899_vm4, %v913_v61, %v915_v62  ;;  %v986_v30 = vsel %vm971_vm5, %v983_v42, %v985_v63  ;;  %v988_v32 = vsel %vm971_vm5, %v985_v63, %v987_v25  ;;  %v991_v34 = vrot.slane %v5558_v51, 6 }
 0x102   : > { %4505 = vrot.lane.b32.xlu1 %v4504_v53, %s5085_s29  ;;  %v640_v35 = vrot.slane %v5604_v16, 1  ;;  %v642_v1 = vrot.slane %v5612_v21, 1  ;;  %v710_v33 = vrot.slane %v5604_v16, 2  ;;  %v712_v36 = vrot.slane %v5612_v21, 2 }
 0x103   : > { %v780_v37 = vrot.slane %v5604_v16, 3  ;;  %v782_v39 = vrot.slane %v5612_v21, 3  ;;  %v850_v40 = vrot.slane %v5604_v16, 4  ;;  %v4539_v41 = vpack.i.bf16 %v916_v29, %v914_v28 }
 0x104   : > { %v4544_v42 = vpack.i.bf16 %v988_v32, %v986_v30  ;;  %v637_v43 = vsel %vm618_vm0, %v634_v44, %v636_v2  ;;  %v639_v45 = vsel %vm618_vm0, %v636_v2, %v638_v4  ;;  %v707_v47 = vsel %vm688_vm2, %v704_v46, %v706_v5 }
 0x105   : > { %4510 = vrot.lane.b32.xlu0 %v4509_v3, %s5086_s18  ;;  %v709_v48 = vsel %vm688_vm2, %v706_v5, %v708_v14  ;;  %v852_v50 = vrot.slane %v5612_v21, 4  ;;  %v921_v52 = vrot.slane %v5604_v16, 5  ;;  %v923_v44 = vrot.slane %v5612_v21, 5 }
 0x106   : > { %4515 = vrot.lane.b32.xlu1 %v4514_v6, %s5087_s17  ;;  %v993_v53 = vrot.slane %v5604_v16, 6  ;;  %v995_v54 = vrot.slane %v5612_v21, 6  ;;  %v644_v55 = vrot.slane %v5636_v38, 1  ;;  %v714_v46 = vrot.slane %v5636_v38, 2 }
 0x107   : > { %v784_v57 = vrot.slane %v5636_v38, 3  ;;  %v4549_v58 = vpack.i.bf16 %v639_v45, %v637_v43  ;;  %v4554_v59 = vpack.i.bf16 %v709_v48, %v707_v47  ;;  %v777_v61 = vsel %vm758_vm1, %v774_v49, %v776_v15 }
 0x108   : > { %v779_v63 = vsel %vm758_vm1, %v776_v15, %v778_v17  ;;  %v847_v2 = vsel %vm828_vm3, %v844_v60, %v846_v18  ;;  %v849_v3 = vsel %vm828_vm3, %v846_v18, %v848_v19  ;;  %v854_v5 = vrot.slane %v5636_v38, 4 }
 0x109   : > { %4520 = vrot.lane.b32.xlu0 %v4519_v8, %s5082_s19  ;;  %v925_v6 = vrot.slane %v5636_v38, 5  ;;  %v927_v7 = vrot.slane %v5661_v56, 5  ;;  %v997_v49 = vrot.slane %v5636_v38, 6  ;;  %v999_v8 = vrot.slane %v5661_v56, 6 }
 0x10a   : > { %4525 = vrot.lane.b32.xlu1 %v4524_v22, %s5084_s21  ;;  %v4559_v9 = vpack.i.bf16 %v779_v63, %v777_v61  ;;  %v4564_v60 = vpack.i.bf16 %v849_v3, %v847_v2  ;;  %v918_v10 = vsel %vm899_vm4, %v915_v62, %v917_v20  ;;  %v920_v11 = vsel %vm899_vm4, %v917_v20, %v919_v23 }
 0x10b   : > { %v990_v12 = vsel %vm971_vm5, %v987_v25, %v989_v24  ;;  %v992_v13 = vsel %vm971_vm5, %v989_v24, %v991_v34  ;;  %v4569_v15 = vpack.i.bf16 %v920_v11, %v918_v10  ;;  %v641_v16 = vsel %vm618_vm0, %v638_v4, %v640_v35 }
 0x10c   : > { %v4574_v62 = vpack.i.bf16 %v992_v13, %v990_v12  ;;  %v643_v31 = vsel %vm618_vm0, %v640_v35, %v642_v1  ;;  %v711_v25 = vsel %vm688_vm2, %v708_v14, %v710_v33  ;;  %v713_v18 = vsel %vm688_vm2, %v710_v33, %v712_v36 }
 0x10d   : > { %4530 = vrot.lane.b32.xlu0 %v4529_v26, %s5083_s20  ;;  %v4579_v20 = vpack.i.bf16 %v643_v31, %v641_v16  ;;  %v4584_v22 = vpack.i.bf16 %v713_v18, %v711_v25  ;;  %v781_v4 = vsel %vm758_vm1, %v778_v17, %v780_v37  ;;  %v783_v24 = vsel %vm758_vm1, %v780_v37, %v782_v39 }
 0x10e   : > { %4535 = vrot.lane.b32.xlu1 %v4534_v27, %s5085_s29  ;;  %v851_v14 = vsel %vm828_vm3, %v848_v19, %v850_v40  ;;  %v853_v26 = vsel %vm828_vm3, %v850_v40, %v852_v50  ;;  %v4589_v27 = vpack.i.bf16 %v783_v24, %v781_v4  ;;  %v922_v17 = vsel %vm899_vm4, %v919_v23, %v921_v52 }
 0x10f   : > { %v4594_v28 = vpack.i.bf16 %v853_v26, %v851_v14  ;;  %v924_v29 = vsel %vm899_vm4, %v921_v52, %v923_v44  ;;  %v994_v19 = vsel %vm971_vm5, %v991_v34, %v993_v53  ;;  %v996_v30 = vsel %vm971_vm5, %v993_v53, %v995_v54  ;;  %v4784_v14 = vld [vmem:[%s5412_s28 + $0x18] sm:$0xff] }
 0x110   : > { %v4599_v32 = vpack.i.bf16 %v924_v29, %v922_v17  ;;  %v4604_v35 = vpack.i.bf16 %v996_v30, %v994_v19  ;;  %v645_v23 = vsel %vm618_vm0, %v642_v1, %v644_v55  ;;  %v715_v51 = vsel %vm688_vm2, %v712_v36, %v714_v46 }
 0x111   : > { %4540 = vrot.lane.b32.xlu0 %v4539_v41, %s5086_s18  ;;  %v4609_v34 = vpack.i.bf16 %v644_v55, %v645_v23  ;;  %v4614_v33 = vpack.i.bf16 %v714_v46, %v715_v51  ;;  %v785_v37 = vsel %vm758_vm1, %v782_v39, %v784_v57  ;;  %v855_v38 = vsel %vm828_vm3, %v852_v50, %v854_v5  ;;  %v4782_v46 = vld [vmem:[%s5412_s28 + $0x8] sm:$0xff] }
 0x112   : > { %4545 = vrot.lane.b32.xlu1 %v4544_v42, %s5087_s17  ;;  %v4619_v1 = vpack.i.bf16 %v784_v57, %v785_v37  ;;  %v4624_v36 = vpack.i.bf16 %v854_v5, %v855_v38  ;;  %v926_v40 = vsel %vm899_vm4, %v923_v44, %v925_v6  ;;  %v928_v41 = vsel %vm899_vm4, %v925_v6, %v927_v7 }
 0x113   : > { %v998_v39 = vsel %vm971_vm5, %v995_v54, %v997_v49  ;;  %v1000_v42 = vsel %vm971_vm5, %v997_v49, %v999_v8  ;;  %v4629_v43 = vpack.i.bf16 %v928_v41, %v926_v40 }
 0x114   : > { %v4634_v45 = vpack.i.bf16 %v1000_v42, %v998_v39 }
 0x115   : > { %4550 = vrot.lane.b32.xlu0 %v4549_v58, %s5082_s19  ;;  %v4783_v58 = vld [vmem:[%s5412_s28] sm:$0xff] }
 0x116   : > { %4555 = vrot.lane.b32.xlu1 %v4554_v59, %s5084_s21 }
 0x119   : > { %4560 = vrot.lane.b32.xlu0 %v4559_v9, %s5083_s20 }
 0x11a   : > { %4565 = vrot.lane.b32.xlu1 %v4564_v60, %s5085_s29 }
 0x11d   : > { %4570 = vrot.lane.b32.xlu0 %v4569_v15, %s5086_s18 }
 0x11e   : > { %4575 = vrot.lane.b32.xlu1 %v4574_v62, %s5087_s17 }
 0x121   : > { %4580 = vrot.lane.b32.xlu0 %v4579_v20, %s5082_s19 }
 0x122   : > { %4585 = vrot.lane.b32.xlu1 %v4584_v22, %s5084_s21 }
 0x125   : > { %4590 = vrot.lane.b32.xlu0 %v4589_v27, %s5083_s20  ;;  %v4785_v27 = vld [vmem:[%s5412_s28 + $0x10] sm:$0xff] }
 0x126   : > { %4595 = vrot.lane.b32.xlu1 %v4594_v28, %s5085_s29 }
 0x129   : > { %4600 = vrot.lane.b32.xlu0 %v4599_v32, %s5086_s18 }
 0x12a   : > { %4605 = vrot.lane.b32.xlu1 %v4604_v35, %s5087_s17 }
 0x12d   : > { %4610 = vrot.lane.b32.xlu0 %v4609_v34, %s5082_s19 }
 0x12e   : > { %4615 = vrot.lane.b32.xlu1 %v4614_v33, %s5084_s21  ;;  %s6341_s21 = sld [smem:[#allocation21_spill]] }
 0x131   : > { %4620 = vrot.lane.b32.xlu0 %v4619_v1, %s5083_s20 }
 0x132   : > { %4625 = vrot.lane.b32.xlu1 %v4624_v36, %s5085_s29 }
 0x135   : > { %4630 = vrot.lane.b32.xlu0 %v4629_v43, %s5086_s18  ;;  %s581_s18 = sand.u32 1, %s6341_s21   ;;  %s4998_s21 = scalar_lea.vmem %s4997_s12, 32 }
 0x136   : > { %4635 = vrot.lane.b32.xlu1 %v4634_v45, %s5087_s17  ;;  %s582_s23 = scalar_lea.vmem [#allocation14], %s581_s18  ;;  %s3508_s20 = scalar_lea.sflag [#allocation4], %s581_s18 }
 0x137   : > { %s3520_s25 = sshll.u32 %s582_s23, 4  ;;  %s6243_s25 = int_to_ptr.vmem [resolvable:$true] %s3520_s25 }
 0x138   : > { %s4992_s22 = scalar_lea.vmem %s6243_s25, 16  ;;  %p4999_p13 = scmp.lt.s32.totalorder %s6243_s25, %s4997_s12 }
 0x139   : > { %p4993_p4 = scmp.ne.s32.totalorder %s6243_s25, %s4992_s22  ;;  %p5000_p0 = scmp.lt.s32.totalorder %s4998_s21, %s4992_s22 }
 0x13b   : > { %p4994_p8 = pnand %p4993_p4, %p6346_p7  ;;  %p5001_p1 = por %p5000_p0, %p4999_p13 }
 0x13d   : > { %p4995_p11 = pneg %p4994_p8 }
 0x13f   : > { %p5002_p6 = pnand %p5001_p1, %p4995_p11 }
 0x157   : > { %v4431_v47 = vpop.permute.xlu0 %4430 }
 0x158   : > { %v4441_v48 = vpop.permute.xlu1 %4440  ;;  %v4433_v50 = vunpack.i.h.bf16 %v4431_v47  ;;  %v4432_v21 = vunpack.i.l.bf16 %v4431_v47 }
 0x159   : > { %v4443_v44 = vunpack.i.h.bf16 %v4441_v48  ;;  %v4442_v53 = vunpack.i.l.bf16 %v4441_v48 }
 0x15a   : > { %v1045_v57 = vsel %vm1043_vm7, %v4782_v46, %v4433_v50  ;;  %v1044_v59 = vsel %vm1043_vm7, %v4783_v58, %v4432_v21 }
 0x15b   : > { %v4436_v52 = vpop.permute.xlu0 %4435 }
 0x15c   : > { %v4438_v54 = vunpack.i.h.bf16 %v4436_v52  ;;  %v4437_v55 = vunpack.i.l.bf16 %v4436_v52  ;;  %v4446_v56 = vpop.permute.xlu1 %4445 }
 0x15d   : > { %v4448_v61 = vunpack.i.h.bf16 %v4446_v56  ;;  %v4447_v63 = vunpack.i.l.bf16 %v4446_v56  ;;  %v4786_v56 = vld [vmem:[%s5412_s28 + $0x28] sm:$0xff] }
 0x15e   : > { %v1059_v2 = vsel %vm1058_vm8, %v1044_v59, %v4437_v55  ;;  %v1060_v3 = vsel %vm1058_vm8, %v1045_v57, %v4438_v54  ;;  %v4787_v57 = vld [vmem:[%s5412_s28 + $0x20] sm:$0xff] }
 0x15f   : > { %v1074_v5 = vsel %vm1073_vm9, %v1059_v2, %v4442_v53  ;;  %v1075_v6 = vsel %vm1073_vm9, %v1060_v3, %v4443_v44  ;;  %v4451_v7 = vpop.permute.xlu0 %4450 }
 0x160   : > { %v1089_v49 = vsel %vm1088_vm10, %v1074_v5, %v4447_v63  ;;  %v1090_v8 = vsel %vm1088_vm10, %v1075_v6, %v4448_v61  ;;  %v4453_v9 = vunpack.i.h.bf16 %v4451_v7  ;;  %v4452_v60 = vunpack.i.l.bf16 %v4451_v7  ;;  %v4456_v10 = vpop.permute.xlu1 %4455 }
 0x161   : > { %v4458_v11 = vunpack.i.h.bf16 %v4456_v10  ;;  %v4457_v12 = vunpack.i.l.bf16 %v4456_v10 }
 0x162   : > { %v1104_v13 = vsel %vm1103_vm11, %v1089_v49, %v4452_v60  ;;  %v1105_v15 = vsel %vm1103_vm11, %v1090_v8, %v4453_v9 }
 0x163   : > { %v1119_v62 = vsel %vm1118_vm12, %v1104_v13, %v4457_v12  ;;  %v1120_v16 = vsel %vm1118_vm12, %v1105_v15, %v4458_v11  ;;  %v4461_v31 = vpop.permute.xlu0 %4460 }
 0x164   : > { %v1133_v25 = vpack.c.bf16 %v1120_v16, %v1119_v62  ;;  %v4463_v18 = vunpack.i.h.bf16 %v4461_v31  ;;  %v4462_v20 = vunpack.i.l.bf16 %v4461_v31  ;;  %v4466_v22 = vpop.permute.xlu1 %4465 }
 0x165   : > { %v4468_v4 = vunpack.i.h.bf16 %v4466_v22  ;;  %v4467_v24 = vunpack.i.l.bf16 %v4466_v22 }
 0x166   : > { %v1047_v26 = vsel %vm1043_vm7, %v4784_v14, %v4463_v18  ;;  %v1046_v28 = vsel %vm1043_vm7, %v4785_v27, %v4462_v20  ;;  %4088 = vmatmul.mubr.msk.bf16.vlgmr.msra.gmra.mrb[0].mxu0 %vm1203_vm13, %v1133_v25 }
 0x167   : > { %v4471_v17 = vpop.permute.xlu0 %4470  ;;  %4091 = vmatprep.mubr.msk.bf16.mxu0 %vm5088_vm6, %v5081_v0  ;;  %v1061_v32 = vsel %vm1058_vm8, %v1046_v28, %v4467_v24  ;;  %v1062_v35 = vsel %vm1058_vm8, %v1047_v26, %v4468_v4  ;;  %v4788_v28 = vld [vmem:[%s5412_s28 + $0x38] sm:$0xff] }
 0x168   : > { %v4473_v29 = vunpack.i.h.bf16 %v4471_v17  ;;  %v4472_v19 = vunpack.i.l.bf16 %v4471_v17  ;;  %v4476_v30 = vpop.permute.xlu1 %4475 }
 0x169   : > { %v4478_v23 = vunpack.i.h.bf16 %v4476_v30  ;;  %v4477_v51 = vunpack.i.l.bf16 %v4476_v30 }
 0x16a   : > { %v1076_v34 = vsel %vm1073_vm9, %v1061_v32, %v4472_v19  ;;  %v1077_v33 = vsel %vm1073_vm9, %v1062_v35, %v4473_v29  ;;  %v4789_v29 = vld [vmem:[%s5412_s28 + $0x30] sm:$0xff] }
 0x16b   : > { %v4481_v37 = vpop.permute.xlu0 %4480  ;;  %v1091_v40 = vsel %vm1088_vm10, %v1076_v34, %v4477_v51  ;;  %v1092_v41 = vsel %vm1088_vm10, %v1077_v33, %v4478_v23 }
 0x16c   : > { %v4483_v38 = vunpack.i.h.bf16 %v4481_v37  ;;  %v4482_v1 = vunpack.i.l.bf16 %v4481_v37  ;;  %v4486_v36 = vpop.permute.xlu1 %4485 }
 0x16d   : > { %v4488_v39 = vunpack.i.h.bf16 %v4486_v36  ;;  %v4487_v42 = vunpack.i.l.bf16 %v4486_v36 }
 0x16e   : > { %v1106_v43 = vsel %vm1103_vm11, %v1091_v40, %v4482_v1  ;;  %v1107_v45 = vsel %vm1103_vm11, %v1092_v41, %v4483_v38 }
 0x16f   : > { %v1121_v47 = vsel %vm1118_vm12, %v1106_v43, %v4487_v42  ;;  %v1122_v48 = vsel %vm1118_vm12, %v1107_v45, %v4488_v39  ;;  %v4491_v50 = vpop.permute.xlu0 %4490 }
 0x170   : > { %v1134_v21 = vpack.c.bf16 %v1122_v48, %v1121_v47  ;;  %v4493_v52 = vunpack.i.h.bf16 %v4491_v50  ;;  %v4492_v44 = vunpack.i.l.bf16 %v4491_v50  ;;  %v4496_v53 = vpop.permute.xlu1 %4495 }
 0x171   : > { %v4498_v54 = vunpack.i.h.bf16 %v4496_v53  ;;  %v4497_v55 = vunpack.i.l.bf16 %v4496_v53 }
 0x172   : > { %v1049_v46 = vsel %vm1043_vm7, %v4786_v56, %v4493_v52  ;;  %v1048_v58 = vsel %vm1043_vm7, %v4787_v57, %v4492_v44  ;;  %4092 = vmatmul.mubr.msk.bf16.gmra.mrb[4].mxu0 %vm1203_vm13, %v1134_v21 }
 0x173   : > { %v4501_v59 = vpop.permute.xlu0 %4500  ;;  %4095 = vmatprep.mubr.msk.bf16.mxu0 %vm5088_vm6, %v5081_v0  ;;  %v1063_v3 = vsel %vm1058_vm8, %v1048_v58, %v4497_v55  ;;  %v1064_v5 = vsel %vm1058_vm8, %v1049_v46, %v4498_v54  ;;  %v4790_v58 = vld [vmem:[%s5412_s28 + $0x48] sm:$0xff] }
 0x174   : > { %v4503_v61 = vunpack.i.h.bf16 %v4501_v59  ;;  %v4502_v63 = vunpack.i.l.bf16 %v4501_v59  ;;  %v4506_v2 = vpop.permute.xlu1 %4505 }
 0x175   : > { %v4508_v6 = vunpack.i.h.bf16 %v4506_v2  ;;  %v4507_v7 = vunpack.i.l.bf16 %v4506_v2 }
 0x176   : > { %v1078_v49 = vsel %vm1073_vm9, %v1063_v3, %v4502_v63  ;;  %v1079_v8 = vsel %vm1073_vm9, %v1064_v5, %v4503_v61  ;;  %v4791_v61 = vld [vmem:[%s5412_s28 + $0x40] sm:$0xff] }
 0x177   : > { %v4511_v9 = vpop.permute.xlu0 %4510  ;;  %v1093_v12 = vsel %vm1088_vm10, %v1078_v49, %v4507_v7  ;;  %v1094_v13 = vsel %vm1088_vm10, %v1079_v8, %v4508_v6 }
 0x178   : > { %v4513_v60 = vunpack.i.h.bf16 %v4511_v9  ;;  %v4512_v10 = vunpack.i.l.bf16 %v4511_v9  ;;  %v4516_v11 = vpop.permute.xlu1 %4515 }
 0x179   : > { %v4518_v15 = vunpack.i.h.bf16 %v4516_v11  ;;  %v4517_v62 = vunpack.i.l.bf16 %v4516_v11 }
 0x17a   : > { %v1108_v16 = vsel %vm1103_vm11, %v1093_v12, %v4512_v10  ;;  %v1109_v31 = vsel %vm1103_vm11, %v1094_v13, %v4513_v60 }
 0x17b   : > { %v1123_v25 = vsel %vm1118_vm12, %v1108_v16, %v4517_v62  ;;  %v1124_v18 = vsel %vm1118_vm12, %v1109_v31, %v4518_v15  ;;  %v4521_v20 = vpop.permute.xlu0 %4520 }
 0x17c   : > { %v1135_v22 = vpack.c.bf16 %v1124_v18, %v1123_v25  ;;  %v4523_v4 = vunpack.i.h.bf16 %v4521_v20  ;;  %v4522_v24 = vunpack.i.l.bf16 %v4521_v20  ;;  %v4526_v14 = vpop.permute.xlu1 %4525 }
 0x17d   : > { %v4528_v26 = vunpack.i.h.bf16 %v4526_v14  ;;  %v4527_v27 = vunpack.i.l.bf16 %v4526_v14 }
 0x17e   : > { %v1051_v17 = vsel %vm1043_vm7, %v4788_v28, %v4523_v4  ;;  %v1050_v19 = vsel %vm1043_vm7, %v4789_v29, %v4522_v24  ;;  %4096 = vmatmul.mubr.msk.bf16.gmra.mrb[8].mxu0 %vm1203_vm13, %v1135_v22 }
 0x17f   : > { %v4531_v30 = vpop.permute.xlu0 %4530  ;;  %4099 = vmatprep.mubr.msk.bf16.mxu0 %vm5088_vm6, %v5081_v0  ;;  %v1065_v51 = vsel %vm1058_vm8, %v1050_v19, %v4527_v27  ;;  %v1066_v34 = vsel %vm1058_vm8, %v1051_v17, %v4528_v26  ;;  %v4792_v19 = vld [vmem:[%s5412_s28 + $0x58] sm:$0xff] }
 0x180   : > { %v4533_v32 = vunpack.i.h.bf16 %v4531_v30  ;;  %v4532_v35 = vunpack.i.l.bf16 %v4531_v30  ;;  %v4536_v23 = vpop.permute.xlu1 %4535 }
 0x181   : > { %v4538_v33 = vunpack.i.h.bf16 %v4536_v23  ;;  %v4537_v37 = vunpack.i.l.bf16 %v4536_v23 }
 0x182   : > { %v1080_v38 = vsel %vm1073_vm9, %v1065_v51, %v4532_v35  ;;  %v1081_v1 = vsel %vm1073_vm9, %v1066_v34, %v4533_v32  ;;  %v4793_v32 = vld [vmem:[%s5412_s28 + $0x50] sm:$0xff] }
 0x183   : > { %v4541_v36 = vpop.permute.xlu0 %4540  ;;  %v1095_v42 = vsel %vm1088_vm10, %v1080_v38, %v4537_v37  ;;  %v1096_v43 = vsel %vm1088_vm10, %v1081_v1, %v4538_v33 }
 0x184   : > { %v4543_v40 = vunpack.i.h.bf16 %v4541_v36  ;;  %v4542_v41 = vunpack.i.l.bf16 %v4541_v36  ;;  %v4546_v39 = vpop.permute.xlu1 %4545 }
 0x185   : > { %v4548_v45 = vunpack.i.h.bf16 %v4546_v39  ;;  %v4547_v47 = vunpack.i.l.bf16 %v4546_v39 }
 0x186   : > { %v1110_v48 = vsel %vm1103_vm11, %v1095_v42, %v4542_v41  ;;  %v1111_v50 = vsel %vm1103_vm11, %v1096_v43, %v4543_v40 }
 0x187   : > { %v1125_v21 = vsel %vm1118_vm12, %v1110_v48, %v4547_v47  ;;  %v1126_v52 = vsel %vm1118_vm12, %v1111_v50, %v4548_v45  ;;  %v4551_v44 = vpop.permute.xlu0 %4550 }
 0x188   : > { %v1136_v53 = vpack.c.bf16 %v1126_v52, %v1125_v21  ;;  %v4553_v54 = vunpack.i.h.bf16 %v4551_v44  ;;  %v4552_v55 = vunpack.i.l.bf16 %v4551_v44  ;;  %v4556_v56 = vpop.permute.xlu1 %4555 }
 0x189   : > { %v4558_v46 = vunpack.i.h.bf16 %v4556_v56  ;;  %v4557_v57 = vunpack.i.l.bf16 %v4556_v56 }
 0x18a   : > { %v1053_v59 = vsel %vm1043_vm7, %v4790_v58, %v4553_v54  ;;  %v1052_v63 = vsel %vm1043_vm7, %v4791_v61, %v4552_v55  ;;  %4100 = vmatmul.mubr.msk.bf16.gmra.mrb[12].mxu0 %vm1203_vm13, %v1136_v53 }
 0x18b   : > { %v4561_v2 = vpop.permute.xlu0 %4560  ;;  %4103 = vmatprep.mubr.msk.bf16.mxu0 %vm5088_vm6, %v5081_v0  ;;  %v1067_v7 = vsel %vm1058_vm8, %v1052_v63, %v4557_v57  ;;  %v1068_v49 = vsel %vm1058_vm8, %v1053_v59, %v4558_v46  ;;  %v4794_v63 = vld [vmem:[%s5412_s28 + $0x68] sm:$0xff] }
 0x18c   : > { %v4563_v3 = vunpack.i.h.bf16 %v4561_v2  ;;  %v4562_v5 = vunpack.i.l.bf16 %v4561_v2  ;;  %v4566_v6 = vpop.permute.xlu1 %4565 }
 0x18d   : > { %v4568_v8 = vunpack.i.h.bf16 %v4566_v6  ;;  %v4567_v9 = vunpack.i.l.bf16 %v4566_v6 }
 0x18e   : > { %v1082_v60 = vsel %vm1073_vm9, %v1067_v7, %v4562_v5  ;;  %v1083_v10 = vsel %vm1073_vm9, %v1068_v49, %v4563_v3  ;;  %v4795_v3 = vld [vmem:[%s5412_s28 + $0x60] sm:$0xff]  ;;  %s6345_s28 = sld [smem:[#allocation32_spill]] }
 0x18f   : > { %v4571_v11 = vpop.permute.xlu0 %4570  ;;  %v1097_v62 = vsel %vm1088_vm10, %v1082_v60, %v4567_v9  ;;  %v1098_v16 = vsel %vm1088_vm10, %v1083_v10, %v4568_v8 }
 0x190   : > { %v4573_v12 = vunpack.i.h.bf16 %v4571_v11  ;;  %v4572_v13 = vunpack.i.l.bf16 %v4571_v11  ;;  %v4576_v15 = vpop.permute.xlu1 %4575 }
 0x191   : > { %v4578_v31 = vunpack.i.h.bf16 %v4576_v15  ;;  %v4577_v25 = vunpack.i.l.bf16 %v4576_v15 }
 0x192   : > { %v1112_v18 = vsel %vm1103_vm11, %v1097_v62, %v4572_v13  ;;  %v1113_v20 = vsel %vm1103_vm11, %v1098_v16, %v4573_v12 }
 0x193   : > { %v1127_v22 = vsel %vm1118_vm12, %v1112_v18, %v4577_v25  ;;  %v1128_v4 = vsel %vm1118_vm12, %v1113_v20, %v4578_v31  ;;  %v4581_v24 = vpop.permute.xlu0 %4580 }
 0x194   : > { %v1137_v14 = vpack.c.bf16 %v1128_v4, %v1127_v22  ;;  %v4583_v26 = vunpack.i.h.bf16 %v4581_v24  ;;  %v4582_v27 = vunpack.i.l.bf16 %v4581_v24  ;;  %v4586_v28 = vpop.permute.xlu1 %4585  ;;  %s6241_s19 = scalar_lea.hbm %s6345_s28, %s3833_s26 }
 0x195   : > { %v4588_v17 = vunpack.i.h.bf16 %v4586_v28  ;;  %v4587_v29 = vunpack.i.l.bf16 %v4586_v28  ;;  %v5089_v28 = vmov 0.0|0.0  }
 0x196   : > { %v1055_v30 = vsel %vm1043_vm7, %v4792_v19, %v4583_v26  ;;  %v1054_v35 = vsel %vm1043_vm7, %v4793_v32, %v4582_v27  ;;  %4104 = vmatmul.mubr.msk.bf16.gmra.mrb[16].mxu0 %vm1203_vm13, %v1137_v14  ;;  %4274 = vmatprep.subr.bf16.mxu1 %v5089_v28  ;;  %v4652_v19 = vld [vmem:[#allocation2 + $0xc8] sm:$0xff]   ;;  %v4656_v32 = vld [vmem:[#allocation2 + $0xd0] sm:$0xff]  }
 0x197   : > { %v4591_v23 = vpop.permute.xlu0 %4590  ;;  %4107 = vmatprep.mubr.msk.bf16.mxu0 %vm5088_vm6, %v5081_v0  ;;  %v1069_v37 = vsel %vm1058_vm8, %v1054_v35, %v4587_v29  ;;  %v1070_v38 = vsel %vm1058_vm8, %v1055_v30, %v4588_v17  ;;  %v4648_v17 = vld [vmem:[#allocation2 + $0xc0] sm:$0xff]   ;;  %v4653_v30 = vld [vmem:[#allocation2 + $0x88] sm:$0xff]   ;;  %v4657_v35 = vld [vmem:[#allocation2 + $0x90] sm:$0xff]  }
 0x198   : > { %v4593_v51 = vunpack.i.h.bf16 %v4591_v23  ;;  %v4592_v34 = vunpack.i.l.bf16 %v4591_v23  ;;  %v4596_v33 = vpop.permute.xlu1 %4595  ;;  %v4649_v29 = vld [vmem:[#allocation2 + $0x80] sm:$0xff]   ;;  %3897 = vmatprep.subr.bf16.mxu0 %v4648_v17  ;;  %v4660_v23 = vld [vmem:[#allocation2 + $0xd8] sm:$0xff]  }
 0x199   : > { %v4598_v1 = vunpack.i.h.bf16 %v4596_v33  ;;  %v4597_v36 = vunpack.i.l.bf16 %v4596_v33  ;;  %3898 = vmatpush3.bf16.msra.mxu0 %v4649_v29  ;;  %v5895_v33 = vld [vmem:[%s6285_s2] ss:$0 sm:$0xff] }
 0x19a   : > { %v1084_v40 = vsel %vm1073_vm9, %v1069_v37, %v4592_v34  ;;  %v1085_v41 = vsel %vm1073_vm9, %v1070_v38, %v4593_v51  ;;  %3899 = vmatprep.subr.bf16.mxu0 %v4652_v19  ;;  %v4661_v51 = vld [vmem:[#allocation2 + $0x98] sm:$0xff]   ;;  %v4664_v34 = vld [vmem:[#allocation2 + $0xe0] sm:$0xff]  }
 0x19b   : > { %v4601_v39 = vpop.permute.xlu0 %4600  ;;  %v1099_v47 = vsel %vm1088_vm10, %v1084_v40, %v4597_v36  ;;  %v1100_v48 = vsel %vm1088_vm10, %v1085_v41, %v4598_v1 }
 0x19c   : > { %v4603_v42 = vunpack.i.h.bf16 %v4601_v39  ;;  %v4602_v43 = vunpack.i.l.bf16 %v4601_v39  ;;  %v4606_v45 = vpop.permute.xlu1 %4605 }
 0x19d   : > { %v4608_v50 = vunpack.i.h.bf16 %v4606_v45  ;;  %v4607_v21 = vunpack.i.l.bf16 %v4606_v45  ;;  %3900 = vmatpush3.bf16.msra.mxu0 %v4653_v30 }
 0x19e   : > { %v1114_v52 = vsel %vm1103_vm11, %v1099_v47, %v4602_v43  ;;  %v1115_v44 = vsel %vm1103_vm11, %v1100_v48, %v4603_v42  ;;  %3901 = vmatprep.subr.bf16.mxu0 %v4656_v32 }
 0x19f   : > { %v1129_v53 = vsel %vm1118_vm12, %v1114_v52, %v4607_v21  ;;  %v1130_v54 = vsel %vm1118_vm12, %v1115_v44, %v4608_v50  ;;  %v4611_v55 = vpop.permute.xlu0 %4610 }
 0x1a0   : > { %v1138_v56 = vpack.c.bf16 %v1130_v54, %v1129_v53  ;;  %v4613_v46 = vunpack.i.h.bf16 %v4611_v55  ;;  %v4612_v57 = vunpack.i.l.bf16 %v4611_v55  ;;  %v4616_v58 = vpop.permute.xlu1 %4615 }
 0x1a1   : > { %v4618_v59 = vunpack.i.h.bf16 %v4616_v58  ;;  %v4617_v61 = vunpack.i.l.bf16 %v4616_v58  ;;  %3902 = vmatpush3.bf16.msra.mxu0 %v4657_v35 }
 0x1a2   : > { %v1057_v2 = vsel %vm1043_vm7, %v4794_v63, %v4613_v46  ;;  %v1056_v5 = vsel %vm1043_vm7, %v4795_v3, %v4612_v57  ;;  %4108 = vmatmul.mubr.msk.bf16.gmra.mrb[20].mxu0 %vm1203_vm13, %v1138_v56  ;;  %3903 = vmatprep.subr.bf16.mxu0 %v4660_v23 }
 0x1a3   : > { %v4621_v6 = vpop.permute.xlu0 %4620  ;;  %4111 = vmatprep.mubr.msk.bf16.mxu0 %vm5088_vm6, %v5081_v0  ;;  %v1071_v9 = vsel %vm1058_vm8, %v1056_v5, %v4617_v61  ;;  %v1072_v60 = vsel %vm1058_vm8, %v1057_v2, %v4618_v59  ;;  %vm1480_vm8 = vcmask 867328  }
 0x1a4   : > { %v4623_v7 = vunpack.i.h.bf16 %v4621_v6  ;;  %v4622_v49 = vunpack.i.l.bf16 %v4621_v6  ;;  %v4626_v8 = vpop.permute.xlu1 %4625 }
 0x1a5   : > { %v4628_v10 = vunpack.i.h.bf16 %v4626_v8  ;;  %v4627_v11 = vunpack.i.l.bf16 %v4626_v8  ;;  %3904 = vmatpush3.bf16.msra.mxu0 %v4661_v51 }
 0x1a6   : > { %v1086_v12 = vsel %vm1073_vm9, %v1071_v9, %v4622_v49  ;;  %v1087_v13 = vsel %vm1073_vm9, %v1072_v60, %v4623_v7  ;;  %3905 = vmatprep.subr.bf16.mxu0 %v4664_v34 }
 0x1a7   : > { %v4631_v15 = vpop.permute.xlu0 %4630  ;;  %v1101_v25 = vsel %vm1088_vm10, %v1086_v12, %v4627_v11  ;;  %v1102_v18 = vsel %vm1088_vm10, %v1087_v13, %v4628_v10 }
 0x1a8   : > { %v4633_v62 = vunpack.i.h.bf16 %v4631_v15  ;;  %v4632_v16 = vunpack.i.l.bf16 %v4631_v15  ;;  %v4636_v31 = vpop.permute.xlu1 %4635 }
 0x1a9   : > { %v4638_v20 = vunpack.i.h.bf16 %v4636_v31  ;;  %v4637_v22 = vunpack.i.l.bf16 %v4636_v31 }
 0x1aa   : > { %v1116_v4 = vsel %vm1103_vm11, %v1101_v25, %v4632_v16  ;;  %v1117_v24 = vsel %vm1103_vm11, %v1102_v18, %v4633_v62 }
 0x1ab   : > { %v1131_v14 = vsel %vm1118_vm12, %v1116_v4, %v4637_v22  ;;  %v1132_v26 = vsel %vm1118_vm12, %v1117_v24, %v4638_v20 }
 0x1ac   : > { %v1139_v27 = vpack.c.bf16 %v1132_v26, %v1131_v14 }
 0x1ae   : > { %4112 = vmatmul.mubr.msk.bf16.gmra.mrb[24].mxu0 %vm1203_vm13, %v1139_v27 }
 0x239   : > { %v1259_v37 = vpop.f32.mrb[0].mxu0 }
 0x23a   : > { %v1260_v38 = vadd.f32 %v5895_v33, %v1259_v37  ;;  %v4089_v1 = vpop.f32.mrb[1].mxu0 }
 0x23b   : > { %v1262_v36 = vpop.f32.mrb[2].mxu0 }
 0x23c   : > { %v1314_v40 = vmax.f32 %v1260_v38, 0.0  ;;  %v1263_v41 = vadd.f32 %v5895_v33, %v1262_v36  ;;  %v4090_v39 = vpop.f32.mrb[3].mxu0 }
 0x23e   : > { %v1315_v42 = vmax.f32 %v1263_v41, 0.0  ;;  %v1342_v43 = vrot.slane %v1314_v40, 1  ;;  %v1397_v45 = vrot.slane %v1314_v40, 2 }
 0x240   : > { %v1343_v47 = vrot.slane %v1315_v42, 1  ;;  %v1398_v48 = vrot.slane %v1315_v42, 2 }
 0x242   : > { %v1344_v50 = vsel %vm618_vm0, %v1342_v43, %v1343_v47  ;;  %v1399_v21 = vsel %vm688_vm2, %v1397_v45, %v1398_v48 }
 0x243   : > { %v1383_v52 = vmax.f32 %v1314_v40, %v1344_v50 }
 0x245   : > { %v1267_v44 = vpop.f32.mrb[4].mxu0  ;;  %v1438_v53 = vmax.f32 %v1383_v52, %v1399_v21 }
 0x246   : > { %v1268_v54 = vadd.f32 %v5895_v33, %v1267_v44  ;;  %v4093_v55 = vpop.f32.mrb[5].mxu0 }
 0x247   : > { %v1270_v56 = vpop.f32.mrb[6].mxu0 }
 0x248   : > { %v1316_v46 = vmax.f32 %v1268_v54, 0.0  ;;  %v1271_v57 = vadd.f32 %v5895_v33, %v1270_v56  ;;  %v4094_v58 = vpop.f32.mrb[7].mxu0 }
 0x24a   : > { %v1345_v59 = vrot.slane %v1316_v46, 1  ;;  %v1400_v61 = vrot.slane %v1316_v46, 2  ;;  %v1317_v63 = vmax.f32 %v1271_v57, 0.0 }
 0x24c   : > { %v1347_v2 = vrot.slane %v1317_v63, 1  ;;  %v1402_v3 = vrot.slane %v1317_v63, 2  ;;  %v1346_v5 = vsel %vm618_vm0, %v1343_v47, %v1345_v59  ;;  %v1401_v6 = vsel %vm688_vm2, %v1398_v48, %v1400_v61 }
 0x24d   : > { %v1384_v7 = vmax.f32 %v1315_v42, %v1346_v5 }
 0x24e   : > { %v1348_v49 = vsel %vm618_vm0, %v1345_v59, %v1347_v2  ;;  %v1403_v8 = vsel %vm688_vm2, %v1400_v61, %v1402_v3 }
 0x24f   : > { %v1439_v9 = vmax.f32 %v1384_v7, %v1401_v6  ;;  %v1385_v60 = vmax.f32 %v1316_v46, %v1348_v49 }
 0x251   : > { %v1275_v10 = vpop.f32.mrb[8].mxu0  ;;  %v4275_v11 = vpack.c.bf16 %v1439_v9, %v1438_v53  ;;  %v1440_v12 = vmax.f32 %v1385_v60, %v1403_v8 }
 0x252   : > { %v1276_v13 = vadd.f32 %v5895_v33, %v1275_v10  ;;  %v4097_v15 = vpop.f32.mrb[9].mxu0 }
 0x253   : > { %v1278_v62 = vpop.f32.mrb[10].mxu0  ;;  %4276 = vmatpush3.bf16.msra.mxu1 %v4275_v11 }
 0x254   : > { %v1318_v16 = vmax.f32 %v1276_v13, 0.0  ;;  %v1279_v31 = vadd.f32 %v5895_v33, %v1278_v62  ;;  %v4098_v25 = vpop.f32.mrb[11].mxu0  ;;  %4277 = vmatprep.subr.bf16.mxu1 %v5089_v28 }
 0x256   : > { %v1349_v18 = vrot.slane %v1318_v16, 1  ;;  %v1404_v20 = vrot.slane %v1318_v16, 2  ;;  %v1319_v22 = vmax.f32 %v1279_v31, 0.0 }
 0x258   : > { %v1351_v4 = vrot.slane %v1319_v22, 1  ;;  %v1406_v24 = vrot.slane %v1319_v22, 2  ;;  %v1350_v14 = vsel %vm618_vm0, %v1347_v2, %v1349_v18  ;;  %v1405_v26 = vsel %vm688_vm2, %v1402_v3, %v1404_v20 }
 0x259   : > { %v1386_v27 = vmax.f32 %v1317_v63, %v1350_v14 }
 0x25a   : > { %v1352_v17 = vsel %vm618_vm0, %v1349_v18, %v1351_v4  ;;  %v1407_v29 = vsel %vm688_vm2, %v1404_v20, %v1406_v24 }
 0x25b   : > { %v1441_v19 = vmax.f32 %v1386_v27, %v1405_v26  ;;  %v1387_v30 = vmax.f32 %v1318_v16, %v1352_v17 }
 0x25d   : > { %v1283_v32 = vpop.f32.mrb[12].mxu0  ;;  %v4278_v35 = vpack.c.bf16 %v1441_v19, %v1440_v12  ;;  %v1442_v23 = vmax.f32 %v1387_v30, %v1407_v29 }
 0x25e   : > { %v1284_v51 = vadd.f32 %v5895_v33, %v1283_v32  ;;  %v4101_v34 = vpop.f32.mrb[13].mxu0 }
 0x25f   : > { %v1286_v37 = vpop.f32.mrb[14].mxu0  ;;  %4279 = vmatpush3.bf16.msra.mxu1 %v4278_v35 }
 0x260   : > { %v1320_v38 = vmax.f32 %v1284_v51, 0.0  ;;  %v1287_v1 = vadd.f32 %v5895_v33, %v1286_v37  ;;  %v4102_v36 = vpop.f32.mrb[15].mxu0  ;;  %4280 = vmatprep.subr.bf16.mxu1 %v5089_v28 }
 0x261   : > { %v1452_v36 = vlaneseq }
 0x262   : > { %v1353_v40 = vrot.slane %v1320_v38, 1  ;;  %v1408_v41 = vrot.slane %v1320_v38, 2  ;;  %v1321_v39 = vmax.f32 %v1287_v1, 0.0 }
 0x264   : > { %v1355_v42 = vrot.slane %v1321_v39, 1  ;;  %v1410_v43 = vrot.slane %v1321_v39, 2  ;;  %v1354_v45 = vsel %vm618_vm0, %v1351_v4, %v1353_v40  ;;  %v1409_v47 = vsel %vm688_vm2, %v1406_v24, %v1408_v41 }
 0x265   : > { %v1388_v48 = vmax.f32 %v1319_v22, %v1354_v45 }
 0x266   : > { %v1356_v50 = vsel %vm618_vm0, %v1353_v40, %v1355_v42  ;;  %v1411_v21 = vsel %vm688_vm2, %v1408_v41, %v1410_v43 }
 0x267   : > { %v1443_v52 = vmax.f32 %v1388_v48, %v1409_v47  ;;  %v1389_v44 = vmax.f32 %v1320_v38, %v1356_v50  ;;  %v1453_v47 = vshrl.u32 %v1452_v36, 7 }
 0x269   : > { %v1291_v53 = vpop.f32.mrb[16].mxu0  ;;  %v4281_v54 = vpack.c.bf16 %v1443_v52, %v1442_v23  ;;  %v1444_v55 = vmax.f32 %v1389_v44, %v1411_v21 }
 0x26a   : > { %v1292_v56 = vadd.f32 %v5895_v33, %v1291_v53  ;;  %v4105_v46 = vpop.f32.mrb[17].mxu0 }
 0x26b   : > { %v1294_v57 = vpop.f32.mrb[18].mxu0  ;;  %4282 = vmatpush3.bf16.msra.mxu1 %v4281_v54 }
 0x26c   : > { %v1322_v58 = vmax.f32 %v1292_v56, 0.0  ;;  %v1295_v59 = vadd.f32 %v5895_v33, %v1294_v57  ;;  %v4106_v61 = vpop.f32.mrb[19].mxu0  ;;  %4283 = vmatprep.subr.bf16.mxu1 %v5089_v28  ;;  %v1459_v57 = vand.u32 127, %v1452_v36 }
 0x26e   : > { %v1357_v63 = vrot.slane %v1322_v58, 1  ;;  %v1412_v2 = vrot.slane %v1322_v58, 2  ;;  %v1323_v3 = vmax.f32 %v1295_v59, 0.0  ;;  %v1454_v59 = vadd.s32 8, %v1453_v47 }
 0x270   : > { %v1359_v5 = vrot.slane %v1323_v3, 1  ;;  %v1414_v6 = vrot.slane %v1323_v3, 2  ;;  %v1358_v7 = vsel %vm618_vm0, %v1355_v42, %v1357_v63  ;;  %v1413_v49 = vsel %vm688_vm2, %v1410_v43, %v1412_v2 }
 0x271   : > { %v1390_v8 = vmax.f32 %v1321_v39, %v1358_v7 }
 0x272   : > { %v1360_v9 = vsel %vm618_vm0, %v1357_v63, %v1359_v5  ;;  %v1415_v60 = vsel %vm688_vm2, %v1412_v2, %v1414_v6 }
 0x273   : > { %v1445_v10 = vmax.f32 %v1390_v8, %v1413_v49  ;;  %v1391_v11 = vmax.f32 %v1322_v58, %v1360_v9  ;;  %v1460_v58 = vmul.u32 3, %v1453_v47  ;;  %v4647_v49 = vld [vmem:[#allocation2] sm:$0xff]   ;;  %v1456_v9 = vadd.s32 24, %v1453_v47 }
 0x275   : > { %v1299_v12 = vpop.f32.mrb[20].mxu0  ;;  %v4284_v13 = vpack.c.bf16 %v1445_v10, %v1444_v55  ;;  %v1446_v15 = vmax.f32 %v1391_v11, %v1415_v60  ;;  %vm1465_vm7 = vcmp.eq.s32.totalorder %v1459_v57, %v1460_v58  ;;  %v4650_v60 = vld [vmem:[#allocation2 + $0x48] sm:$0xff]   ;;  %v1463_v11 = vmul.u32 3, %v1456_v9 }
 0x276   : > { %v1300_v62 = vadd.f32 %v5895_v33, %v1299_v12  ;;  %v4109_v16 = vpop.f32.mrb[21].mxu0  ;;  %v5946_v7 = vsel %vm1465_vm7, 1.0, %v5081_v0  ;;  %v4651_v10 = vld [vmem:[#allocation2 + $0x8] sm:$0xff]   ;;  %v1457_v12 = vadd.s32 32, %v1453_v47 }
 0x277   : > { %v1302_v31 = vpop.f32.mrb[22].mxu0  ;;  %4285 = vmatpush3.bf16.msra.mxu1 %v4284_v13  ;;  %v4654_v13 = vld [vmem:[#allocation2 + $0x50] sm:$0xff]   ;;  %vm1468_vm11 = vcmp.eq.s32.totalorder %v1459_v57, %v1463_v11 }
 0x278   : > { %v1324_v25 = vmax.f32 %v1300_v62, 0.0  ;;  %v1303_v18 = vadd.f32 %v5895_v33, %v1302_v31  ;;  %v4110_v20 = vpop.f32.mrb[23].mxu0  ;;  %4286 = vmatprep.subr.bf16.mxu1 %v5089_v28  ;;  %v4655_v62 = vld [vmem:[#allocation2 + $0x10] sm:$0xff]   ;;  %v1464_v16 = vmul.u32 3, %v1457_v12  ;;  %v4658_v31 = vld [vmem:[#allocation2 + $0x58] sm:$0xff]  }
 0x279   : > { %v4662_v20 = vld [vmem:[#allocation2 + $0x60] sm:$0xff]  }
 0x27a   : > { %v1361_v22 = vrot.slane %v1324_v25, 1  ;;  %v1416_v4 = vrot.slane %v1324_v25, 2  ;;  %v1325_v24 = vmax.f32 %v1303_v18, 0.0  ;;  %v4659_v18 = vld [vmem:[#allocation2 + $0x18] sm:$0xff]   ;;  %vm1469_vm12 = vcmp.eq.s32.totalorder %v1459_v57, %v1464_v16 }
 0x27c   : > { %v1363_v14 = vrot.slane %v1325_v24, 1  ;;  %v1418_v26 = vrot.slane %v1325_v24, 2  ;;  %v1362_v27 = vsel %vm618_vm0, %v1359_v5, %v1361_v22  ;;  %v1417_v17 = vsel %vm688_vm2, %v1414_v6, %v1416_v4  ;;  %v4646_v6 = vld [vmem:[#allocation2 + $0x40] sm:$0xff]  }
 0x27d   : > { %v1392_v29 = vmax.f32 %v1323_v3, %v1362_v27  ;;  %v1461_v3 = vmul.u32 3, %v1454_v59  ;;  %v1455_v5 = vadd.s32 16, %v1453_v47  ;;  %v4668_v27 = vld [vmem:[#allocation2 + $0xe8] sm:$0xff]  }
 0x27e   : > { %v1364_v19 = vsel %vm618_vm0, %v1361_v22, %v1363_v14  ;;  %v1419_v30 = vsel %vm688_vm2, %v1416_v4, %v1418_v26  ;;  %v3682_v22 = vsel %vm1469_vm12, 1.0, %v5081_v0  ;;  %v4663_v4 = vld [vmem:[#allocation2 + $0x20] sm:$0xff]  }
 0x27f   : > { %v1447_v32 = vmax.f32 %v1392_v29, %v1417_v17  ;;  %v1393_v35 = vmax.f32 %v1324_v25, %v1364_v19  ;;  %vm1466_vm9 = vcmp.eq.s32.totalorder %v1459_v57, %v1461_v3  ;;  %v1462_v8 = vmul.u32 3, %v1455_v5  ;;  %v4669_v17 = vld [vmem:[#allocation2 + $0xa8] sm:$0xff]   ;;  %v4670_v29 = vld [vmem:[#allocation2 + $0x70] sm:$0xff]  }
 0x280   : > { %v3681_v25 = vsel %vm1468_vm11, 1.0, %v5081_v0  ;;  %v4671_v19 = vld [vmem:[#allocation2 + $0x30] sm:$0xff]  }
 0x281   : > { %v1307_v23 = vpop.f32.mrb[24].mxu0  ;;  %v4287_v51 = vpack.c.bf16 %v1447_v32, %v1446_v15  ;;  %v1448_v34 = vmax.f32 %v1393_v35, %v1419_v30  ;;  %vm1467_vm10 = vcmp.eq.s32.totalorder %v1459_v57, %v1462_v8  ;;  %v4672_v30 = vld [vmem:[#allocation2 + $0xf0] sm:$0xff]   ;;  %v4674_v35 = vld [vmem:[#allocation2 + $0x78] sm:$0xff]  }
 0x282   : > { %v1308_v37 = vadd.f32 %v5895_v33, %v1307_v23  ;;  %v4113_v38 = vpop.f32.mrb[25].mxu0  ;;  %v3680_v15 = vsel %vm1467_vm10, 1.0, %v5081_v0  ;;  %v4673_v32 = vld [vmem:[#allocation2 + $0xb0] sm:$0xff]   ;;  %v4675_v23 = vld [vmem:[#allocation2 + $0x38] sm:$0xff]  }
 0x283   : > { %v1310_v1 = vpop.f32.mrb[26].mxu0  ;;  %4288 = vmatpush3.bf16.msra.mxu1 %v4287_v51  ;;  %v4676_v51 = vld [vmem:[#allocation2 + $0xf8] sm:$0xff]  }
 0x284   : > { %v1326_v40 = vmax.f32 %v1308_v37, 0.0  ;;  %v1311_v41 = vadd.f32 %v5895_v33, %v1310_v1  ;;  %v4114_v39 = vpop.f32.mrb[27].mxu0  ;;  %4289 = vmatprep.subr.bf16.mxu1 %v5089_v28  ;;  %v4678_v37 = vld [vmem:[#allocation2 + $0x140] sm:$0xff]  }
 0x286   : > { %v1365_v42 = vrot.slane %v1326_v40, 1  ;;  %v1420_v43 = vrot.slane %v1326_v40, 2  ;;  %v1327_v45 = vmax.f32 %v1311_v41, 0.0 }
 0x288   : > { %v1367_v48 = vrot.slane %v1327_v45, 1  ;;  %v1422_v50 = vrot.slane %v1327_v45, 2  ;;  %v1366_v21 = vsel %vm618_vm0, %v1363_v14, %v1365_v42  ;;  %v1421_v52 = vsel %vm688_vm2, %v1418_v26, %v1420_v43  ;;  %v4666_v14 = vld [vmem:[#allocation2 + $0x68] sm:$0xff]  }
 0x289   : > { %v1394_v44 = vmax.f32 %v1325_v24, %v1366_v21  ;;  %v4665_v24 = vld [vmem:[#allocation2 + $0xa0] sm:$0xff]   ;;  %v4667_v26 = vld [vmem:[#allocation2 + $0x28] sm:$0xff]  }
 0x28a   : > { %v1368_v53 = vsel %vm618_vm0, %v1365_v42, %v1367_v48  ;;  %v1396_v54 = vmax.f32 %v1327_v45, %v1367_v48  ;;  %v1423_v55 = vsel %vm688_vm2, %v1420_v43, %v1422_v50  ;;  %3906 = vmatpush3.bf16.msra.mxu0 %v4665_v24 }
 0x28b   : > { %v1395_v33 = vmax.f32 %v1326_v40, %v1368_v53  ;;  %v1449_v56 = vmax.f32 %v1394_v44, %v1421_v52  ;;  %3907 = vmatprep.subr.bf16.mxu0 %v4668_v27 }
 0x28c   : > { %v1451_v46 = vmax.f32 %v1396_v54, %v1422_v50 }
 0x28d   : > { %v4290_v61 = vpack.c.bf16 %v1449_v56, %v1448_v34  ;;  %v1450_v63 = vmax.f32 %v1395_v33, %v1423_v55  ;;  %v4677_v34 = vld [vmem:[#allocation2 + $0xb8] sm:$0xff]  }
 0x28e   : > { %3908 = vmatpush3.bf16.msra.mxu0 %v4669_v17 }
 0x28f   : > { %4291 = vmatpush3.bf16.msra.mxu1 %v4290_v61  ;;  %v4293_v2 = vpack.c.bf16 %v1451_v46, %v1450_v63  ;;  %3909 = vmatprep.subr.bf16.mxu0 %v4672_v30 }
 0x290   : > { %4292 = vmatprep.subr.bf16.mxu1 %v5089_v28  ;;  %v5953_v28 = vsel %vm1466_vm9, 1.0, %v5081_v0 }
 0x292   : > { %3910 = vmatpush3.bf16.msra.mxu0 %v4673_v32 }
 0x293   : > { %4295 = vmatpush3.bf16.msk.msra.mxu1 %vm4294_vm15, %v4293_v2  ;;  %3911 = vmatprep.subr.bf16.mxu0 %v4676_v51 }
 0x294   : > { %3869 = vmatprep.subr.bf16.mxu1 %v4646_v6 }
 0x296   : > { %4144 = vmatmul.mubr.msk.f32.vlgmr.msra.gmra.mrb[0].mxu1 %vm1480_vm8, %v5946_v7  ;;  %3912 = vmatpush3.bf16.msra.mxu0 %v4677_v34 }
 0x297   : > { %4146 = vmatprep.mubr.msk.f32.mxu1 %vm5088_vm6, %v5081_v0  ;;  %3870 = vmatpush3.bf16.msra.mxu1 %v4647_v49 }
 0x298   : > { %3871 = vmatprep.subr.bf16.mxu1 %v4650_v60 }
 0x29a   : > { %4147 = vmatmul.mubr.msk.f32.gmra.mrb[2].mxu1 %vm1480_vm8, %v5953_v28 }
 0x29b   : > { %4149 = vmatprep.mubr.msk.f32.mxu1 %vm5088_vm6, %v5081_v0  ;;  %3872 = vmatpush3.bf16.msra.mxu1 %v4651_v10 }
 0x29c   : > { %3873 = vmatprep.subr.bf16.mxu1 %v4654_v13 }
 0x29e   : > { %4150 = vmatmul.mubr.msk.f32.gmra.mrb[4].mxu1 %vm1480_vm8, %v3680_v15 }
 0x29f   : > { %4152 = vmatprep.mubr.msk.f32.mxu1 %vm5088_vm6, %v5081_v0  ;;  %3874 = vmatpush3.bf16.msra.mxu1 %v4655_v62  ;;  %v4679_v62 = vld [vmem:[#allocation2 + $0x100] sm:$0xff]  }
 0x2a0   : > { %3875 = vmatprep.subr.bf16.mxu1 %v4658_v31 }
 0x2a2   : > { %4153 = vmatmul.mubr.msk.f32.gmra.mrb[6].mxu1 %vm1480_vm8, %v3681_v25 }
 0x2a3   : > { %4155 = vmatprep.mubr.msk.f32.mxu1 %vm5088_vm6, %v5081_v0  ;;  %3876 = vmatpush3.bf16.msra.mxu1 %v4659_v18 }
 0x2a4   : > { %3877 = vmatprep.subr.bf16.mxu1 %v4662_v20  ;;  %v4680_v20 = vld [vmem:[#allocation2 + $0x148] sm:$0xff]  }
 0x2a6   : > { %4156 = vmatmul.mubr.msk.f32.gmra.mrb[8].mxu1 %vm1480_vm8, %v3682_v22 }
 0x2a7   : > { %3878 = vmatpush3.bf16.msra.mxu1 %v4663_v4 }
 0x2a8   : > { %3879 = vmatprep.subr.bf16.mxu1 %v4666_v14 }
 0x2ab   : > { %3880 = vmatpush3.bf16.msra.mxu1 %v4667_v26 }
 0x2ac   : > { %3881 = vmatprep.subr.bf16.mxu1 %v4670_v29 }
 0x2af   : > { %3882 = vmatpush3.bf16.msra.mxu1 %v4671_v19 }
 0x2b0   : > { %3883 = vmatprep.subr.bf16.mxu1 %v4674_v35 }
 0x2b3   : > { %3884 = vmatpush3.bf16.msra.mxu1 %v4675_v23  ;;  %v4681_v23 = vld [vmem:[#allocation2 + $0x108] sm:$0xff]  }
 0x2b4   : > { %3925 = vmatprep.subr.bf16.mxu1 %v4678_v37 }
 0x369   : > { %v1565_v38 = vpop.f32.mrb[0].mxu1 }
 0x36a   : > { %v4145_v1 = vpop.f32.mrb[1].mxu1  ;;  %v1604_v36 = vrot.slane %v1565_v38, 2  ;;  %v1629_v40 = vrot.slane %v1565_v38, 4  ;;  %v1593_v39 = vrot.slane %v1565_v38, 1  ;;  %v1616_v42 = vrot.slane %v1565_v38, 3 }
 0x36b   : > { %v1642_v43 = vrot.slane %v1565_v38, 5  ;;  %v1655_v53 = vrot.slane %v1565_v38, 6 }
 0x36d   : > { %v1570_v41 = vpop.f32.mrb[2].mxu1 }
 0x36e   : > { %v1605_v45 = vrot.slane %v1570_v41, 2  ;;  %v1630_v47 = vrot.slane %v1570_v41, 4  ;;  %v4148_v48 = vpop.f32.mrb[3].mxu1  ;;  %v1594_v50 = vrot.slane %v1570_v41, 1  ;;  %v1617_v21 = vrot.slane %v1570_v41, 3 }
 0x36f   : > { %v1668_v52 = vpack.c.bf16 %v1570_v41, %v1565_v38  ;;  %v1643_v44 = vrot.slane %v1570_v41, 5  ;;  %v1656_v54 = vrot.slane %v1570_v41, 6  ;;  %v4682_v41 = vld [vmem:[#allocation2 + $0x150] sm:$0xff]  }
 0x370   : > { %v1595_v55 = vsel %vm618_vm0, %v1593_v39, %v1594_v50  ;;  %v1618_v33 = vsel %vm758_vm1, %v1616_v42, %v1617_v21  ;;  %v1606_v56 = vsel %vm688_vm2, %v1604_v36, %v1605_v45  ;;  %v5973_v46 = vsel %vm828_vm3, %v1629_v40, %v1630_v47 }
 0x371   : > { %v5975_v57 = vpop.f32.mrb[4].mxu1  ;;  %v5978_v58 = vsel %vm899_vm4, %v1642_v43, %v1643_v44  ;;  %v5981_v59 = vsel %vm971_vm5, %v1655_v53, %v1656_v54 }
 0x372   : > { %v1607_v61 = vrot.slane %v5975_v57, 2  ;;  %v1632_v63 = vrot.slane %v5975_v57, 4  ;;  %v4151_v2 = vpop.f32.mrb[5].mxu1  ;;  %v1596_v3 = vrot.slane %v5975_v57, 1  ;;  %v1619_v5 = vrot.slane %v5975_v57, 3 }
 0x373   : > { %v1645_v6 = vrot.slane %v5975_v57, 5  ;;  %v1658_v49 = vrot.slane %v5975_v57, 6  ;;  %v4691_v2 = vld [vmem:[#allocation2 + $0x130] sm:$0xff]  }
 0x374   : > { %v1597_v8 = vsel %vm618_vm0, %v1594_v50, %v1596_v3  ;;  %v1620_v9 = vsel %vm758_vm1, %v1617_v21, %v1619_v5  ;;  %v1608_v60 = vsel %vm688_vm2, %v1605_v45, %v1607_v61  ;;  %v5993_v10 = vsel %vm828_vm3, %v1630_v47, %v1632_v63 }
 0x375   : > { %v1580_v11 = vpop.f32.mrb[6].mxu1  ;;  %v1669_v12 = vpack.c.bf16 %v1597_v8, %v1595_v55  ;;  %v1671_v13 = vpack.c.bf16 %v1620_v9, %v1618_v33  ;;  %v1670_v15 = vpack.c.bf16 %v1608_v60, %v1606_v56  ;;  %v1646_v16 = vsel %vm899_vm4, %v1643_v44, %v1645_v6  ;;  %v4683_v44 = vld [vmem:[#allocation2 + $0x110] sm:$0xff]   ;;  %v4684_v33 = vld [vmem:[#allocation2 + $0x158] sm:$0xff]   ;;  %v4698_v60 = vld [vmem:[#allocation2 + $0x1a0] sm:$0xff]  }
 0x376   : > { %v4154_v31 = vpop.f32.mrb[7].mxu1  ;;  %v1660_v25 = vrot.slane %v1580_v11, 6  ;;  %v1598_v18 = vrot.slane %v1580_v11, 1  ;;  %v1621_v22 = vrot.slane %v1580_v11, 3  ;;  %v1675_v4 = vpack.c.bf16 %v1580_v11, %v5975_v57  ;;  %v4685_v56 = vld [vmem:[#allocation2 + $0x118] sm:$0xff]   ;;  %v4686_v57 = vld [vmem:[#allocation2 + $0x160] sm:$0xff]  }
 0x377   : > { %2169 = vmatprep.mubr.bf16.mxu1 %v1669_v12  ;;  %2218 = vmatprep.mubr.bf16.mxu0 %v1671_v13  ;;  %v1609_v24 = vrot.slane %v1580_v11, 2  ;;  %v1673_v14 = vpack.c.bf16 %v1646_v16, %v5978_v58  ;;  %v1672_v26 = vpack.c.bf16 %v5993_v10, %v5973_v46  ;;  %v1647_v27 = vrot.slane %v1580_v11, 5  ;;  %v4687_v58 = vld [vmem:[#allocation2 + $0x120] sm:$0xff]   ;;  %v4696_v8 = vld [vmem:[#allocation2 + $0x190] sm:$0xff]   ;;  %v4697_v9 = vld [vmem:[#allocation2 + $0x198] sm:$0xff]  }
 0x378   : > { %2170 = vmatmul.mubr.bf16.vlgmr.msra.gmra.mrb[12].mxu1 %v1668_v52  ;;  %2219 = vmatmul.mubr.bf16.vlgmr.msra.gmra.mrb[28].mxu0 %v1670_v15  ;;  %v1599_v17 = vsel %vm618_vm0, %v1596_v3, %v1598_v18  ;;  %v1622_v29 = vsel %vm758_vm1, %v1619_v5, %v1621_v22  ;;  %v1634_v19 = vrot.slane %v1580_v11, 4  ;;  %v6003_v30 = vsel %vm971_vm5, %v1656_v54, %v1658_v49  ;;  %v4692_v3 = vld [vmem:[#allocation2 + $0x178] sm:$0xff]   ;;  %v4699_v11 = vld [vmem:[#allocation2 + $0x1a8] sm:$0xff]   ;;  %v4700_v12 = vld [vmem:[#allocation2 + $0x1b0] sm:$0xff]  }
 0x379   : > { %3926 = vmatpush3.bf16.msra.mxu1 %v4679_v62  ;;  %v1585_v32 = vpop.f32.mrb[8].mxu1  ;;  %v1676_v35 = vpack.c.bf16 %v1598_v18, %v1599_v17  ;;  %v1610_v51 = vsel %vm688_vm2, %v1607_v61, %v1609_v24  ;;  %v1648_v34 = vsel %vm899_vm4, %v1645_v6, %v1647_v27  ;;  %v1674_v37 = vpack.c.bf16 %v6003_v30, %v5981_v59  ;;  %v4688_v59 = vld [vmem:[#allocation2 + $0x168] sm:$0xff]   ;;  %v4693_v5 = vld [vmem:[#allocation2 + $0x138] sm:$0xff]   ;;  %v4694_v6 = vld [vmem:[#allocation2 + $0x180] sm:$0xff]  }
 0x37a   : > { %v1623_v38 = vrot.slane %v1585_v32, 3  ;;  %v1636_v1 = vrot.slane %v1585_v32, 4  ;;  %v1649_v36 = vrot.slane %v1585_v32, 5  ;;  %v1662_v40 = vrot.slane %v1585_v32, 6  ;;  %3927 = vmatprep.subr.bf16.mxu1 %v4680_v20  ;;  %v4157_v39 = vpop.f32.mrb[9].mxu1  ;;  %v4689_v61 = vld [vmem:[#allocation2 + $0x128] sm:$0xff]  }
 0x37b   : > { %2177 = vmatprep.mubr.bf16.mxu1 %v1676_v35  ;;  %v1677_v42 = vpack.c.bf16 %v1609_v24, %v1610_v51  ;;  %v1635_v43 = vsel %vm828_vm3, %v1632_v63, %v1634_v19  ;;  %v6011_v45 = vsel %vm971_vm5, %v1658_v49, %v1660_v25  ;;  %v4690_v63 = vld [vmem:[#allocation2 + $0x170] sm:$0xff]   ;;  %v4695_v49 = vld [vmem:[#allocation2 + $0x188] sm:$0xff]   ;;  %v4701_v46 = vld [vmem:[#allocation2 + $0x1b8] sm:$0xff]  }
 0x37c   : > { %v6014_v47 = vsel %vm971_vm5, %v1660_v25, %v1662_v40  ;;  %v1624_v48 = vsel %vm758_vm1, %v1621_v22, %v1623_v38  ;;  %v1650_v50 = vsel %vm899_vm4, %v1647_v27, %v1649_v36  ;;  %v1637_v21 = vsel %vm828_vm3, %v1634_v19, %v1636_v1  ;;  %v4702_v10 = vld [vmem:[%s6288_s5 + $0x40] sm:$0xff]   ;;  %v4705_v15 = vld [vmem:[%s6288_s5 + $0x48] sm:$0xff]   ;;  %v4708_v16 = vld [vmem:[%s6288_s5 + $0x50] sm:$0xff]  }
 0x37d   : > { %3928 = vmatpush3.bf16.msra.mxu1 %v4681_v23  ;;  %v1678_v52 = vpack.c.bf16 %v1624_v48, %v1622_v29  ;;  %v1680_v53 = vpack.c.bf16 %v1650_v50, %v1648_v34  ;;  %v1679_v54 = vpack.c.bf16 %v1637_v21, %v1635_v43  ;;  %v1681_v55 = vpack.c.bf16 %v6014_v47, %v6011_v45  ;;  %v4704_v13 = vld [vmem:[%s6288_s5] sm:$0xff]   ;;  %v4707_v62 = vld [vmem:[%s6288_s5 + $0x8] sm:$0xff]   ;;  %v4710_v31 = vld [vmem:[%s6288_s5 + $0x10] sm:$0xff]  }
 0x37e   : > { %3929 = vmatprep.subr.bf16.mxu1 %v4682_v41  ;;  %vm2371_vm1 = vcmask 228352   ;;  %v4711_v25 = vld [vmem:[%s6288_s5 + $0x58] sm:$0xff]   ;;  %v4714_v20 = vld [vmem:[%s6288_s5 + $0x60] sm:$0xff]   ;;  %v4719_v24 = vld [vmem:[%s6288_s5 + $0x28] sm:$0xff]  }
 0x37f   : > { %2226 = vmatprep.mubr.bf16.mxu0 %v1678_v52  ;;  %v4713_v18 = vld [vmem:[%s6288_s5 + $0x18] sm:$0xff]   ;;  %v4716_v22 = vld [vmem:[%s6288_s5 + $0x20] sm:$0xff]   ;;  %vm4301_vm4 = vmpackc.low %vm828_vm3, %vm5090_vm14 }
 0x380   : > { %2178 = vmatmul.mubr.bf16.gmra.mrb[16].mxu1 %v1675_v4  ;;  %2227 = vmatmul.mubr.bf16.gmra.mrb[32].mxu0 %v1677_v42  ;;  %v4717_v4 = vld [vmem:[%s6288_s5 + $0x68] sm:$0xff]   ;;  %v3689_v27 = vld [vmem:[#allocation5] ss:$0 sm:$0xff] }
 0x381   : > { %3930 = vmatpush3.bf16.msra.mxu1 %v4683_v44  ;;  %2267 = vmatprep.mubr.bf16.mxu1 %v1673_v14 }
 0x382   : > { %3931 = vmatprep.subr.bf16.mxu1 %v4684_v33  ;;  %4186 = vmatprep.mubr.msk.f32.mxu0 %vm2371_vm1, %v5946_v7 }
 0x385   : > { %3932 = vmatpush3.bf16.msra.mxu1 %v4685_v56 }
 0x386   : > { %3933 = vmatprep.subr.bf16.mxu1 %v4686_v57 }
 0x389   : > { %3934 = vmatpush3.bf16.msra.mxu1 %v4687_v58 }
 0x38a   : > { %3935 = vmatprep.subr.bf16.mxu1 %v4688_v59 }
 0x38d   : > { %3936 = vmatpush3.bf16.msra.mxu1 %v4689_v61 }
 0x38e   : > { %3937 = vmatprep.subr.bf16.mxu1 %v4690_v63 }
 0x391   : > { %3938 = vmatpush3.bf16.msra.mxu1 %v4691_v2 }
 0x392   : > { %3939 = vmatprep.subr.bf16.mxu1 %v4692_v3 }
 0x395   : > { %3940 = vmatpush3.bf16.msra.mxu1 %v4693_v5 }
 0x396   : > { %4158 = vmatprep.subr.bf16.mxu1 %v4694_v6 }
 0x398   : > { %2268 = vmatmul.mubr.bf16.vlgmr.msra.gmra.mrb[20].mxu1 %v1672_v26 }
 0x399   : > { %2275 = vmatprep.mubr.bf16.mxu1 %v1680_v53  ;;  %4159 = vmatpush3.bf16.msra.mxu1 %v4694_v6 }
 0x39a   : > { %4160 = vmatprep.subr.bf16.mxu1 %v4695_v49 }
 0x39d   : > { %4161 = vmatpush3.bf16.msra.mxu1 %v4695_v49 }
 0x39e   : > { %4162 = vmatprep.subr.bf16.mxu1 %v4696_v8 }
 0x3a0   : > { %2276 = vmatmul.mubr.bf16.gmra.mrb[24].mxu1 %v1679_v54 }
 0x3a1   : > { %4163 = vmatpush3.bf16.msra.mxu1 %v4696_v8  ;;  %4174 = vmatprep.mubr.bf16.mxu1 %v1674_v37 }
 0x3a2   : > { %4164 = vmatprep.subr.bf16.mxu1 %v4697_v9 }
 0x3a5   : > { %4165 = vmatpush3.bf16.msra.mxu1 %v4697_v9 }
 0x3a6   : > { %4166 = vmatprep.subr.bf16.mxu1 %v4698_v60 }
 0x3a9   : > { %4167 = vmatpush3.bf16.msra.mxu1 %v4698_v60 }
 0x3aa   : > { %4168 = vmatprep.subr.bf16.mxu1 %v4699_v11 }
 0x3ad   : > { %4169 = vmatpush3.bf16.msra.mxu1 %v4699_v11 }
 0x3ae   : > { %4170 = vmatprep.subr.bf16.mxu1 %v4700_v12 }
 0x3b1   : > { %4171 = vmatpush3.bf16.msra.mxu1 %v4700_v12 }
 0x3b2   : > { %4172 = vmatprep.subr.bf16.mxu1 %v4701_v46 }
 0x3b5   : > { %4173 = vmatpush3.bf16.msra.mxu1 %v4701_v46 }
 0x3b6   : > { %3969 = vmatprep.subr.bf16.mxu1 %v4702_v10 }
 0x3b8   : > { %4175 = vmatmul.mubr.bf16.vlgmr.msra.gmra.mrb[28].mxu1 %v1681_v55 }
 0x3b9   : > { %3970 = vmatpush3.bf16.msra.mxu1 %v4704_v13 }
 0x3ba   : > { %3971 = vmatprep.subr.bf16.mxu1 %v4705_v15 }
 0x3bd   : > { %3972 = vmatpush3.bf16.msra.mxu1 %v4707_v62 }
 0x3be   : > { %3973 = vmatprep.subr.bf16.mxu1 %v4708_v16 }
 0x3c1   : > { %3974 = vmatpush3.bf16.msra.mxu1 %v4710_v31 }
 0x3c2   : > { %3975 = vmatprep.subr.bf16.mxu1 %v4711_v25 }
 0x3c5   : > { %3976 = vmatpush3.bf16.msra.mxu1 %v4713_v18 }
 0x3c6   : > { %3977 = vmatprep.subr.bf16.mxu1 %v4714_v20 }
 0x3c9   : > { %3978 = vmatpush3.bf16.msra.mxu1 %v4716_v22 }
 0x3ca   : > { %3979 = vmatprep.subr.bf16.mxu1 %v4717_v4 }
 0x3cd   : > { %3980 = vmatpush3.bf16.msra.mxu1 %v4719_v24 }
 0x44b   : > { %v3885_v14 = vpop.f32.mrb[12].mxu1  ;;  %v3913_v26 = vpop.f32.mrb[28].mxu0 }
 0x44c   : > { %v3886_v17 = vpop.f32.mrb[13].mxu1  ;;  %v3914_v29 = vpop.f32.mrb[29].mxu0 }
 0x44d   : > { %v3887_v19 = vadd.f32 %v3886_v17, %v3885_v14  ;;  %v3915_v30 = vadd.f32 %v3914_v29, %v3913_v26  ;;  %v3888_v32 = vpop.f32.mrb[14].mxu1  ;;  %v3916_v35 = vpop.f32.mrb[30].mxu0 }
 0x44e   : > { %v3889_v23 = vpop.f32.mrb[15].mxu1  ;;  %v3917_v51 = vpop.f32.mrb[31].mxu0 }
 0x44f   : > { %v2172_v34 = vadd.f32 %v3887_v19, %v3689_v27  ;;  %v3890_v37 = vadd.f32 %v3889_v23, %v3888_v32  ;;  %v3918_v38 = vadd.f32 %v3917_v51, %v3916_v35 }
 0x451   : > { %v2221_v1 = vadd.f32 %v3915_v30, %v2172_v34  ;;  %v2175_v36 = vadd.f32 %v3890_v37, %v3689_v27 }
 0x453   : > { %v2224_v40 = vadd.f32 %v3918_v38, %v2175_v36  ;;  %v3891_v41 = vpop.f32.mrb[16].mxu1  ;;  %v3919_v39 = vpop.f32.mrb[32].mxu0 }
 0x454   : > { %v3892_v42 = vpop.f32.mrb[17].mxu1  ;;  %v3920_v43 = vpop.f32.mrb[33].mxu0 }
 0x455   : > { %v3893_v45 = vadd.f32 %v3892_v42, %v3891_v41  ;;  %v3921_v47 = vadd.f32 %v3920_v43, %v3919_v39  ;;  %v3894_v48 = vpop.f32.mrb[18].mxu1  ;;  %v3922_v50 = vpop.f32.mrb[34].mxu0 }
 0x456   : > { %v3895_v21 = vpop.f32.mrb[19].mxu1  ;;  %v3923_v52 = vpop.f32.mrb[35].mxu0 }
 0x457   : > { %v2180_v44 = vadd.f32 %v3893_v45, %v3689_v27  ;;  %v3896_v53 = vadd.f32 %v3895_v21, %v3894_v48  ;;  %v3924_v54 = vadd.f32 %v3923_v52, %v3922_v50  ;;  %v4703_v50 = vld [vmem:[%s6288_s5 + $0x80] sm:$0xff]   ;;  %v4706_v21 = vld [vmem:[%s6288_s5 + $0x88] sm:$0xff]   ;;  %v4709_v52 = vld [vmem:[%s6288_s5 + $0x90] sm:$0xff]  }
 0x459   : > { %v2229_v55 = vadd.f32 %v3921_v47, %v2180_v44  ;;  %v2183_v33 = vadd.f32 %v3896_v53, %v3689_v27  ;;  %v4715_v44 = vld [vmem:[%s6288_s5 + $0xa0] sm:$0xff]   ;;  %v4718_v53 = vld [vmem:[%s6288_s5 + $0xa8] sm:$0xff]  }
 0x45b   : > { %v2232_v56 = vadd.f32 %v3924_v54, %v2183_v33  ;;  %v4720_v54 = vld [vmem:[%s6288_s5 + $0x70] sm:$0xff]  }
 0x45c   : > { %v4722_v33 = vld [vmem:[%s6288_s5 + $0x30] sm:$0xff]   ;;  %3981 = vmatprep.subr.bf16.mxu1 %v4720_v54  ;;  %v4753_v54 = vld [vmem:[#allocation10 + $0x8] sm:$0xff]  }
 0x45d   : > { %3982 = vmatpush3.bf16.msra.mxu1 %v4722_v33  ;;  %v4755_v33 = vld [vmem:[#allocation10 + $0x10] sm:$0xff]  }
 0x46b   : > { %v3941_v57 = vpop.f32.mrb[20].mxu1 }
 0x46c   : > { %v3942_v58 = vpop.f32.mrb[21].mxu1 }
 0x46d   : > { %v3943_v59 = vadd.f32 %v3942_v58, %v3941_v57  ;;  %v3944_v61 = vpop.f32.mrb[22].mxu1  ;;  %v4724_v57 = vld [vmem:[%s6288_s5 + $0xb8] sm:$0xff]  }
 0x46e   : > { %v3945_v63 = vpop.f32.mrb[23].mxu1  ;;  %v4725_v58 = vld [vmem:[%s6288_s5 + $0x38] sm:$0xff]  }
 0x46f   : > { %v3946_v2 = vadd.f32 %v3945_v63, %v3944_v61  ;;  %v2270_v3 = vadd.f32 %v3943_v59, %v2221_v1  ;;  %v4726_v59 = vld [vmem:[%s6290_s7 + $0x40] sm:$0xff]  }
 0x471   : > { %v2273_v5 = vadd.f32 %v3946_v2, %v2224_v40 }
 0x473   : > { %v3947_v6 = vpop.f32.mrb[24].mxu1 }
 0x474   : > { %v3948_v49 = vpop.f32.mrb[25].mxu1 }
 0x475   : > { %v3949_v8 = vadd.f32 %v3948_v49, %v3947_v6  ;;  %v3950_v9 = vpop.f32.mrb[26].mxu1 }
 0x476   : > { %v3951_v60 = vpop.f32.mrb[27].mxu1 }
 0x477   : > { %v3952_v11 = vadd.f32 %v3951_v60, %v3950_v9  ;;  %v2278_v12 = vadd.f32 %v3949_v8, %v2229_v55  ;;  %v4721_v55 = vld [vmem:[%s6288_s5 + $0xb0] sm:$0xff]   ;;  %v4727_v9 = vld [vmem:[%s6290_s7 + $0x80] sm:$0xff]  }
 0x479   : > { %v2281_v46 = vadd.f32 %v3952_v11, %v2232_v56  ;;  %v4723_v56 = vld [vmem:[%s6288_s5 + $0x78] sm:$0xff]  }
 0x47a   : > { %3983 = vmatprep.subr.bf16.mxu1 %v4723_v56  ;;  %v4756_v56 = vld [vmem:[#allocation10 + $0x58] sm:$0xff]  }
 0x47b   : > { %3984 = vmatpush3.bf16.msra.mxu1 %v4725_v58  ;;  %v4758_v58 = vld [vmem:[#allocation10 + $0x60] sm:$0xff]  }
 0x47c   : > { %4000 = vmatprep.subr.bf16.mxu1 %v4726_v59  ;;  %v4759_v59 = vld [vmem:[#allocation10 + $0x20] sm:$0xff]  }
 0x48b   : > { %v4176_v10 = vpop.f32.mrb[28].mxu1 }
 0x48c   : > { %v2327_v13 = vadd.f32 %v4176_v10, %v2278_v12  ;;  %v2318_v15 = vpop.f32.mrb[29].mxu1  ;;  %v4728_v12 = vld [vmem:[%s6290_s7] sm:$0xff]   ;;  %v4729_v10 = vld [vmem:[%s6290_s7 + $0x48] sm:$0xff]  }
 0x48d   : > { %v2319_v62 = vadd.f32 %v2318_v15, %v2270_v3  ;;  %v4177_v16 = vpop.f32.mrb[30].mxu1  ;;  %v4731_v15 = vld [vmem:[%s6290_s7 + $0x8] sm:$0xff]  }
 0x48e   : > { %v2335_v31 = vmax.f32 %v2327_v13, 0.0  ;;  %v2330_v25 = vadd.f32 %v4177_v16, %v2281_v46  ;;  %v2321_v18 = vpop.f32.mrb[31].mxu1  ;;  %v4730_v13 = vld [vmem:[%s6290_s7 + $0x88] sm:$0xff]   ;;  %v4733_v16 = vld [vmem:[%s6290_s7 + $0x90] sm:$0xff]  }
 0x48f   : > { %v2333_v20 = vmax.f32 %v2319_v62, 0.0  ;;  %v2322_v22 = vadd.f32 %v2321_v18, %v2273_v5  ;;  %v4732_v62 = vld [vmem:[%s6290_s7 + $0x50] sm:$0xff]   ;;  %v4736_v18 = vld [vmem:[%s6290_s7 + $0x98] sm:$0xff]  }
 0x490   : > { %v2336_v4 = vmax.f32 %v2330_v25, 0.0  ;;  %v2344_v14 = vrot.slane %v2335_v31, 1  ;;  %v2359_v26 = vrot.slane %v2335_v31, 2  ;;  %v4735_v25 = vld [vmem:[%s6290_s7 + $0x58] sm:$0xff]  }
 0x491   : > { %v2334_v24 = vmax.f32 %v2322_v22, 0.0  ;;  %v2341_v29 = vrot.slane %v2333_v20, 1  ;;  %v2356_v19 = vrot.slane %v2333_v20, 2  ;;  %v4738_v22 = vld [vmem:[%s6290_s7 + $0x60] sm:$0xff]  }
 0x492   : > { %v2346_v27 = vrot.slane %v2336_v4, 1  ;;  %v2361_v17 = vrot.slane %v2336_v4, 2 }
 0x493   : > { %v2342_v30 = vrot.slane %v2334_v24, 1  ;;  %v2357_v32 = vrot.slane %v2334_v24, 2 }
 0x494   : > { %v2347_v35 = vsel %vm618_vm0, %v2344_v14, %v2346_v27  ;;  %v2355_v23 = vmax.f32 %v2336_v4, %v2346_v27  ;;  %v2362_v51 = vsel %vm688_vm2, %v2359_v26, %v2361_v17  ;;  %v4739_v4 = vld [vmem:[%s6290_s7 + $0xa0] sm:$0xff]   ;;  %v4743_v27 = vld [vmem:[%s6290_s7 + $0x28] sm:$0xff]  }
 0x495   : > { %v2354_v34 = vmax.f32 %v2335_v31, %v2347_v35  ;;  %v2345_v37 = vsel %vm618_vm0, %v2342_v30, %v2344_v14  ;;  %v2343_v38 = vsel %vm618_vm0, %v2341_v29, %v2342_v30  ;;  %v2358_v1 = vsel %vm688_vm2, %v2356_v19, %v2357_v32  ;;  %v4734_v31 = vld [vmem:[%s6290_s7 + $0x10] sm:$0xff]   ;;  %v4741_v14 = vld [vmem:[%s6290_s7 + $0x68] sm:$0xff]   ;;  %v4747_v30 = vld [vmem:[%s6290_s7 + $0x78] sm:$0xff]  }
 0x496   : > { %v2370_v36 = vmax.f32 %v2355_v23, %v2361_v17  ;;  %v2353_v40 = vmax.f32 %v2334_v24, %v2345_v37  ;;  %v2352_v41 = vmax.f32 %v2333_v20, %v2343_v38  ;;  %v2360_v39 = vsel %vm688_vm2, %v2357_v32, %v2359_v26  ;;  %v4737_v20 = vld [vmem:[%s6290_s7 + $0x18] sm:$0xff]   ;;  %v4740_v24 = vld [vmem:[%s6290_s7 + $0x20] sm:$0xff]   ;;  %v4742_v26 = vld [vmem:[%s6290_s7 + $0xa8] sm:$0xff]  }
 0x497   : > { %v2369_v42 = vmax.f32 %v2354_v34, %v2362_v51  ;;  %v4744_v17 = vld [vmem:[%s6290_s7 + $0x70] sm:$0xff]   ;;  %v4748_v32 = vld [vmem:[%s6290_s7 + $0xb8] sm:$0xff]  }
 0x498   : > { %v2367_v43 = vmax.f32 %v2352_v41, %v2358_v1  ;;  %v2368_v45 = vmax.f32 %v2353_v40, %v2360_v39  ;;  %v4745_v29 = vld [vmem:[%s6290_s7 + $0xb0] sm:$0xff]   ;;  %v4749_v35 = vld [vmem:[%s6290_s7 + $0x38] sm:$0xff]  }
 0x499   : > { %v4300_v47 = vpack.c.bf16 %v2370_v36, %v2369_v42  ;;  %v4746_v19 = vld [vmem:[%s6290_s7 + $0x30] sm:$0xff]   ;;  %v3749_v37 = vld [vmem:[#allocation7] ss:$0 sm:$0xff] }
 0x49a   : > { %v4296_v48 = vpack.c.bf16 %v2368_v45, %v2367_v43 }
 0x49c   : > { %4297 = vmatprep.subr.bf16.mxu0 %v4296_v48 }
 0x49d   : > { %4299 = vmatpush3.bf16.msra.mxu0 %v4296_v48 }
 0x49e   : > { %4302 = vmatprep.subr.msk.bf16.mxu0 %vm4301_vm4, %v4300_v47 }
 0x4a1   : > { %4305 = vmatpush3.bf16.msk.msra.mxu0 %vm4301_vm4, %v4300_v47 }
 0x4a2   : > { %4189 = vmatprep.subr.bf16.mxu0 %v5081_v0 }
 0x4a4   : > { %4187 = vmatmul.mubr.msk.f32.vlgmr.msra.gmra.mrb[36].mxu0 %vm2371_vm1, %v5953_v28  ;;  %v4712_v28 = vld [vmem:[%s6288_s5 + $0x98] sm:$0xff]  }
 0x4a5   : > { %4190 = vmatpush3.bf16.msra.mxu0 %v4703_v50  ;;  %4205 = vmatprep.mubr.msk.bf16.mxu0 %vm5088_vm6, %v5081_v0 }
 0x4a6   : > { %4191 = vmatprep.subr.bf16.mxu0 %v5081_v0 }
 0x4a9   : > { %4192 = vmatpush3.bf16.msra.mxu0 %v4706_v21 }
 0x4aa   : > { %4193 = vmatprep.subr.bf16.mxu0 %v5081_v0 }
 0x4ad   : > { %4194 = vmatpush3.bf16.msra.mxu0 %v4709_v52 }
 0x4ae   : > { %4195 = vmatprep.subr.bf16.mxu0 %v5081_v0 }
 0x4b1   : > { %4196 = vmatpush3.bf16.msra.mxu0 %v4712_v28  ;;  %v4750_v28 = vld [vmem:[#allocation10 + $0x40] sm:$0xff]  }
 0x4b2   : > { %4197 = vmatprep.subr.bf16.mxu0 %v5081_v0 }
 0x4b5   : > { %4198 = vmatpush3.bf16.msra.mxu0 %v4715_v44  ;;  %v4751_v44 = vld [vmem:[#allocation10] sm:$0xff]  }
 0x4b6   : > { %4199 = vmatprep.subr.bf16.mxu0 %v5081_v0 }
 0x4b9   : > { %4200 = vmatpush3.bf16.msra.mxu0 %v4718_v53  ;;  %v4752_v53 = vld [vmem:[#allocation10 + $0x48] sm:$0xff]  }
 0x4ba   : > { %4201 = vmatprep.subr.bf16.mxu0 %v5081_v0 }
 0x4bd   : > { %4202 = vmatpush3.bf16.msra.mxu0 %v4721_v55  ;;  %v4754_v55 = vld [vmem:[#allocation10 + $0x50] sm:$0xff]  }
 0x4be   : > { %4203 = vmatprep.subr.bf16.mxu0 %v5081_v0 }
 0x4c1   : > { %4204 = vmatpush3.bf16.msra.mxu0 %v4724_v57  ;;  %v4757_v57 = vld [vmem:[#allocation10 + $0x18] sm:$0xff]  }
 0x4c2   : > { %4209 = vmatprep.subr.bf16.mxu0 %v5081_v0 }
 0x577   : > { %v4188_v61 = vpop.f32.mrb[36].mxu0 }
 0x578   : > { %v2457_v63 = vrot.slane %v4188_v61, 1  ;;  %v2461_v2 = vrot.slane %v4188_v61, 2  ;;  %v2445_v3 = vpop.f32.mrb[37].mxu0  ;;  %v4760_v61 = vld [vmem:[#allocation10 + $0x68] sm:$0xff]  }
 0x579   : > { %v2456_v5 = vrot.slane %v2445_v3, 1  ;;  %v2460_v6 = vrot.slane %v2445_v3, 2  ;;  %v2464_v46 = vpack.c.bf16 %v2445_v3, %v2445_v3  ;;  %v4763_v3 = vld [vmem:[#allocation10 + $0x30] sm:$0xff]  }
 0x57b   : > { %v2458_v49 = vsel %vm618_vm0, %v2456_v5, %v2457_v63  ;;  %v2462_v8 = vsel %vm688_vm2, %v2460_v6, %v2461_v2  ;;  %v4761_v63 = vld [vmem:[#allocation10 + $0x28] sm:$0xff]   ;;  %v4762_v2 = vld [vmem:[#allocation10 + $0x70] sm:$0xff]   ;;  %vm3042_vm0 = vcmask 31744  }
 0x57c   : > { %v2465_v60 = vpack.c.bf16 %v2458_v49, %v2458_v49  ;;  %v2466_v11 = vpack.c.bf16 %v2462_v8, %v2462_v8  ;;  %v3774_v8 = vld [vmem:[#allocation8] ss:$0 sm:$0xff] }
 0x57e   : > { %2698 = vmatprep.mubr.bf16.mxu1 %v2465_v60  ;;  %4206 = vmatmul.mubr.bf16.vlgmr.msra.gmra.mrb[40].mxu0 %v2466_v11 }
 0x57f   : > { %2699 = vmatmul.mubr.bf16.vlgmr.msra.gmra.mrb[32].mxu1 %v2464_v46  ;;  %4210 = vmatpush3.bf16.msra.mxu0 %v4727_v9 }
 0x580   : > { %4001 = vmatpush3.bf16.msra.mxu1 %v4728_v12  ;;  %4211 = vmatprep.subr.bf16.mxu0 %v5081_v0 }
 0x581   : > { %4002 = vmatprep.subr.bf16.mxu1 %v4729_v10  ;;  %4225 = vmatprep.mubr.msk.bf16.mxu0 %vm5088_vm6, %v5081_v0 }
 0x583   : > { %4212 = vmatpush3.bf16.msra.mxu0 %v4730_v13 }
 0x584   : > { %4003 = vmatpush3.bf16.msra.mxu1 %v4731_v15  ;;  %4213 = vmatprep.subr.bf16.mxu0 %v5081_v0 }
 0x585   : > { %4004 = vmatprep.subr.bf16.mxu1 %v4732_v62 }
 0x587   : > { %4214 = vmatpush3.bf16.msra.mxu0 %v4733_v16 }
 0x588   : > { %4005 = vmatpush3.bf16.msra.mxu1 %v4734_v31  ;;  %4215 = vmatprep.subr.bf16.mxu0 %v5081_v0 }
 0x589   : > { %4006 = vmatprep.subr.bf16.mxu1 %v4735_v25 }
 0x58b   : > { %4216 = vmatpush3.bf16.msra.mxu0 %v4736_v18 }
 0x58c   : > { %4007 = vmatpush3.bf16.msra.mxu1 %v4737_v20  ;;  %4217 = vmatprep.subr.bf16.mxu0 %v5081_v0  ;;  %v4764_v20 = vld [vmem:[#allocation10 + $0x78] sm:$0xff]  }
 0x58d   : > { %4008 = vmatprep.subr.bf16.mxu1 %v4738_v22  ;;  %v4765_v22 = vld [vmem:[#allocation10 + $0x38] sm:$0xff]  }
 0x58f   : > { %4218 = vmatpush3.bf16.msra.mxu0 %v4739_v4  ;;  %v4766_v4 = vld [vmem:[#allocation11] sm:$0xff]  }
 0x590   : > { %4009 = vmatpush3.bf16.msra.mxu1 %v4740_v24  ;;  %4219 = vmatprep.subr.bf16.mxu0 %v5081_v0  ;;  %v4767_v24 = vld [vmem:[#allocation11 + $0x8] sm:$0xff]  }
 0x591   : > { %4010 = vmatprep.subr.bf16.mxu1 %v4741_v14  ;;  %v4768_v14 = vld [vmem:[#allocation11 + $0x10] sm:$0xff]  }
 0x593   : > { %4220 = vmatpush3.bf16.msra.mxu0 %v4742_v26  ;;  %v4770_v26 = vld [vmem:[#allocation11 + $0x20] sm:$0xff]  }
 0x594   : > { %4011 = vmatpush3.bf16.msra.mxu1 %v4743_v27  ;;  %4221 = vmatprep.subr.bf16.mxu0 %v5081_v0  ;;  %v4771_v27 = vld [vmem:[#allocation11 + $0x28] sm:$0xff]  }
 0x595   : > { %4012 = vmatprep.subr.bf16.mxu1 %v4744_v17 }
 0x597   : > { %4222 = vmatpush3.bf16.msra.mxu0 %v4745_v29 }
 0x598   : > { %4013 = vmatpush3.bf16.msra.mxu1 %v4746_v19  ;;  %4223 = vmatprep.subr.bf16.mxu0 %v5081_v0 }
 0x599   : > { %4014 = vmatprep.subr.bf16.mxu1 %v4747_v30 }
 0x59b   : > { %4224 = vmatpush3.bf16.msra.mxu0 %v4748_v32 }
 0x59c   : > { %4015 = vmatpush3.bf16.msra.mxu1 %v4749_v35  ;;  %4033 = vmatprep.subr.bf16.mxu0 %v4750_v28  ;;  %v4772_v35 = vld [vmem:[#allocation11 + $0x30] sm:$0xff]   ;;  %v3310_v28 = vld [vmem:[%s6342_s27] sm:$0x1] }
 0x59d   : > { %4229 = vmatprep.subr.mxu1 %v5081_v0 }
 0x651   : > { %v2740_v23 = vpop.f32.mrb[40].mxu0 }
 0x652   : > { %v3985_v51 = vpop.f32.mrb[32].mxu1  ;;  %v4207_v34 = vpop.f32.mrb[41].mxu0 }
 0x653   : > { %v3986_v38 = vpop.f32.mrb[33].mxu1  ;;  %v2743_v1 = vpop.f32.mrb[42].mxu0  ;;  %v4775_v34 = vld [vmem:[#allocation13 + $0x8] sm:$0xff]  }
 0x654   : > { %v3987_v36 = vadd.f32 %v3986_v38, %v3985_v51  ;;  %v3988_v40 = vpop.f32.mrb[34].mxu1  ;;  %v4208_v41 = vpop.f32.mrb[43].mxu0  ;;  %v4774_v51 = vld [vmem:[#allocation13] sm:$0xff]   ;;  %v4777_v38 = vld [vmem:[#allocation13 + $0x18] sm:$0xff]  }
 0x655   : > { %v3989_v39 = vpop.f32.mrb[35].mxu1  ;;  %v4778_v1 = vld [vmem:[#allocation13 + $0x20] sm:$0xff]  }
 0x656   : > { %v2701_v42 = vadd.f32 %v3987_v36, %v3749_v37  ;;  %v4776_v37 = vld [vmem:[#allocation13 + $0x10] sm:$0xff]   ;;  %v4779_v36 = vld [vmem:[#allocation13 + $0x28] sm:$0xff]   ;;  %v3155_v41 = vld [vmem:[%s6293_s10] sm:$0x1] }
 0x658   : > { %v2741_v43 = vadd.f32 %v2740_v23, %v2701_v42  ;;  %v4773_v23 = vld [vmem:[#allocation11 + $0x38] sm:$0xff]  }
 0x65a   : > { %v2746_v45 = vmax.f32 %v2741_v43, 0.0 }
 0x65c   : > { %v2748_v47 = vrot.slane %v2746_v45, 1  ;;  %v2750_v48 = vrot.slane %v2746_v45, 2  ;;  %v2752_v52 = vpack.c.bf16 %v2746_v45, %v2746_v45 }
 0x65e   : > { %v2753_v50 = vpack.c.bf16 %v2748_v47, %v2748_v47  ;;  %v2754_v21 = vpack.c.bf16 %v2750_v48, %v2750_v48 }
 0x660   : > { %2986 = vmatprep.mubr.bf16.mxu1 %v2753_v50  ;;  %4226 = vmatmul.mubr.bf16.vlgmr.msra.gmra.mrb[44].mxu0 %v2754_v21  ;;  %v4780_v21 = vld [vmem:[#allocation13 + $0x30] sm:$0xff]  }
 0x661   : > { %2987 = vmatmul.mubr.bf16.vlgmr.msra.gmra.mrb[36].mxu1 %v2752_v52  ;;  %4034 = vmatpush3.bf16.msra.mxu0 %v4751_v44  ;;  %v4781_v52 = vld [vmem:[#allocation13 + $0x38] sm:$0xff]  }
 0x662   : > { %4231 = vmatprep.mubr.msk.f32.mxu1 %vm5088_vm6, %v5081_v0  ;;  %4035 = vmatprep.subr.bf16.mxu0 %v4752_v53 }
 0x665   : > { %4036 = vmatpush3.bf16.msra.mxu0 %v4753_v54 }
 0x666   : > { %4037 = vmatprep.subr.bf16.mxu0 %v4754_v55 }
 0x669   : > { %4038 = vmatpush3.bf16.msra.mxu0 %v4755_v33 }
 0x66a   : > { %4039 = vmatprep.subr.bf16.mxu0 %v4756_v56 }
 0x66d   : > { %4040 = vmatpush3.bf16.msra.mxu0 %v4757_v57 }
 0x66e   : > { %4041 = vmatprep.subr.bf16.mxu0 %v4758_v58 }
 0x671   : > { %4042 = vmatpush3.bf16.msra.mxu0 %v4759_v59 }
 0x672   : > { %4043 = vmatprep.subr.bf16.mxu0 %v4760_v61 }
 0x675   : > { %4044 = vmatpush3.bf16.msra.mxu0 %v4761_v63 }
 0x676   : > { %4045 = vmatprep.subr.bf16.mxu0 %v4762_v2 }
 0x679   : > { %4046 = vmatpush3.bf16.msra.mxu0 %v4763_v3 }
 0x67a   : > { %4047 = vmatprep.subr.bf16.mxu0 %v4764_v20 }
 0x67d   : > { %4048 = vmatpush3.bf16.msra.mxu0 %v4765_v22 }
 0x67e   : > { %4254 = vmatprep.subr.bf16.mxu0 %v5081_v0 }
 0x733   : > { %v3028_v5 = vpop.f32.mrb[44].mxu0 }
 0x734   : > { %v4016_v6 = vpop.f32.mrb[36].mxu1  ;;  %v4227_v49 = vpop.f32.mrb[45].mxu0 }
 0x735   : > { %v4017_v9 = vpop.f32.mrb[37].mxu1  ;;  %v3031_v60 = vpop.f32.mrb[46].mxu0 }
 0x736   : > { %v4018_v11 = vadd.f32 %v4017_v9, %v4016_v6  ;;  %v4019_v12 = vpop.f32.mrb[38].mxu1  ;;  %v4228_v46 = vpop.f32.mrb[47].mxu0 }
 0x737   : > { %v4020_v10 = vpop.f32.mrb[39].mxu1 }
 0x738   : > { %v2989_v13 = vadd.f32 %v4018_v11, %v3774_v8 }
 0x73a   : > { %v3029_v15 = vadd.f32 %v3028_v5, %v2989_v13 }
 0x73c   : > { %v3034_v62 = vmax.f32 %v3029_v15, 0.0 }
 0x73e   : > { %v3036_v16 = vrot.slane %v3034_v62, 1  ;;  %v3039_v25 = vrot.slane %v3034_v62, 2 }
 0x740   : > { %v3038_v31 = vmax.f32 %v3034_v62, %v3036_v16 }
 0x742   : > { %v3041_v18 = vmax.f32 %v3038_v31, %v3039_v25 }
 0x744   : > { %4230 = vmatpush3.msk.msra.mxu1 %vm828_vm3, %v3041_v18 }
 0x745   : > { %4232 = vmatmul.mubr.msk.f32.vlgmr.msra.gmra.mrb[10].mxu1 %vm3042_vm0, %v5946_v7  ;;  %4234 = vmatprep.subr.bf16.mxu1 %v5081_v0  ;;  %v4769_v7 = vld [vmem:[#allocation11 + $0x18] sm:$0xff]  }
 0x746   : > { %4250 = vmatprep.mubr.msk.bf16.mxu1 %vm5088_vm6, %v5081_v0  ;;  %4235 = vmatpush3.bf16.msra.mxu1 %v4766_v4 }
 0x747   : > { %4236 = vmatprep.subr.bf16.mxu1 %v5081_v0 }
 0x74a   : > { %4237 = vmatpush3.bf16.msra.mxu1 %v4767_v24 }
 0x74b   : > { %4238 = vmatprep.subr.bf16.mxu1 %v5081_v0 }
 0x74e   : > { %4239 = vmatpush3.bf16.msra.mxu1 %v4768_v14 }
 0x74f   : > { %4240 = vmatprep.subr.bf16.mxu1 %v5081_v0 }
 0x752   : > { %4241 = vmatpush3.bf16.msra.mxu1 %v4769_v7 }
 0x753   : > { %4242 = vmatprep.subr.bf16.mxu1 %v5081_v0 }
 0x756   : > { %4243 = vmatpush3.bf16.msra.mxu1 %v4770_v26 }
 0x757   : > { %4244 = vmatprep.subr.bf16.mxu1 %v5081_v0 }
 0x75a   : > { %4245 = vmatpush3.bf16.msra.mxu1 %v4771_v27 }
 0x75b   : > { %4246 = vmatprep.subr.bf16.mxu1 %v5081_v0 }
 0x75e   : > { %4247 = vmatpush3.bf16.msra.mxu1 %v4772_v35 }
 0x75f   : > { %4248 = vmatprep.subr.bf16.mxu1 %v5081_v0 }
 0x762   : > { %4249 = vmatpush3.bf16.msra.mxu1 %v4773_v23 }
 0x818   : > { %v3114_v17 = vpop.f32.mrb[10].mxu1 }
 0x819   : > { %v3119_v29 = vrot.slane %v3114_v17, 1  ;;  %v4233_v19 = vpop.f32.mrb[11].mxu1  ;;  %v3121_v32 = vpack.c.bf16 %v3114_v17, %v3114_v17 }
 0x81b   : > { %v3122_v30 = vpack.c.bf16 %v3119_v29, %v3119_v29 }
 0x81d   : > { %3284 = vmatprep.mubr.bf16.mxu0 %v3122_v30 }
 0x81e   : > { %3285 = vmatmul.mubr.bf16.vlgmr.msra.gmra.mrb[48].mxu0 %v3121_v32 }
 0x81f   : > { %4270 = vmatprep.mubr.msk.bf16.mxu0 %vm5088_vm6, %v5081_v0  ;;  %4255 = vmatpush3.bf16.msra.mxu0 %v4774_v51 }
 0x820   : > { %4256 = vmatprep.subr.bf16.mxu0 %v5081_v0 }
 0x823   : > { %4257 = vmatpush3.bf16.msra.mxu0 %v4775_v34 }
 0x824   : > { %4258 = vmatprep.subr.bf16.mxu0 %v5081_v0 }
 0x827   : > { %4259 = vmatpush3.bf16.msra.mxu0 %v4776_v37 }
 0x828   : > { %4260 = vmatprep.subr.bf16.mxu0 %v5081_v0 }
 0x82b   : > { %4261 = vmatpush3.bf16.msra.mxu0 %v4777_v38 }
 0x82c   : > { %4262 = vmatprep.subr.bf16.mxu0 %v5081_v0 }
 0x82f   : > { %4263 = vmatpush3.bf16.msra.mxu0 %v4778_v1 }
 0x830   : > { %4264 = vmatprep.subr.bf16.mxu0 %v5081_v0 }
 0x833   : > { %4265 = vmatpush3.bf16.msra.mxu0 %v4779_v36 }
 0x834   : > { %4266 = vmatprep.subr.bf16.mxu0 %v5081_v0 }
 0x837   : > { %4267 = vmatpush3.bf16.msra.mxu0 %v4780_v21 }
 0x838   : > { %4268 = vmatprep.subr.bf16.mxu0 %v5081_v0  ;;  %v3417_v0 = vld [vmem:[%s6343_s16] sm:$0x1] }
 0x83b   : > { %4269 = vmatpush3.bf16.msra.mxu0 %v4781_v52 }
 0x8f1   : > { %v4049_v40 = vpop.f32.mrb[48].mxu0 }
 0x8f2   : > { %v4050_v39 = vpop.f32.mrb[49].mxu0 }
 0x8f3   : > { %v4051_v42 = vadd.f32 %v4050_v39, %v4049_v40  ;;  %v4052_v43 = vpop.f32.mrb[50].mxu0 }
 0x8f4   : > { %v4053_v45 = vpop.f32.mrb[51].mxu0 }
 0x8f5   : > { %v3287_v47 = vadd.f32 %v4051_v42, %v3155_v41 }
 0x8f7   : > { %v3292_v48 = vmax.f32 %v3287_v47, 0.0 }
 0x8f9   : > { %v3293_v50 = vpack.c.bf16 %v3292_v48, %v3292_v48 }
 0x8fb   : > { %4251 = vmatmul.mubr.bf16.vlgmr.msra.gmra.mrb[40].mxu1 %v3293_v50 }
 0x9ce   : > { %v3393_v44 = vpop.f32.mrb[40].mxu1 }
 0x9cf   : > { %v3394_v53 = vadd.f32 %v3393_v44, %v3310_v28  ;;  %v4252_v54 = vpop.f32.mrb[41].mxu1 }
 0x9d0   : > { %v3396_v55 = vpop.f32.mrb[42].mxu1 }
 0x9d1   : > { %v3399_v33 = vmax.f32 %v3394_v53, 0.0  ;;  %v4253_v56 = vpop.f32.mrb[43].mxu1 }
 0x9d3   : > { %v3400_v57 = vpack.c.bf16 %v3399_v33, %v3399_v33 }
 0x9d5   : > { %4271 = vmatmul.mubr.bf16.vlgmr.msra.gmra.mrb[52].mxu0 %v3400_v57 }
 0xaa8   : > { %v3500_v58 = vpop.f32.mrb[52].mxu0 }
 0xaa9   : > { %v3501_v59 = vadd.f32 %v3500_v58, %v3417_v0  ;;  %v4272_v61 = vpop.f32.mrb[53].mxu0 }
 0xaaa   : > { %v3503_v63 = vpop.f32.mrb[54].mxu0 }
 0xaab   : > { %3506 = vst [vmem:[%s582_s23] sm:$0x1] %v3501_v59  ;;  %v4273_v2 = vpop.f32.mrb[55].mxu0 }
 0xaac   : > { %5005 = shalt.err (!%p5002_p6)
}
 0xaad   : > { %s5006_s29 = scalar_lea.hbm %s6241_s19, 16  ;;  %s5010_s18 = scalar_lea.hbm %s6345_s28, 32 }
 0xaae   : > { %p5007_p5 = scmp.ne.s32.totalorder %s6241_s19, %s5006_s29  ;;  %p5011_p10 = scmp.lt.u32.totalorder %s6241_s19, %s6345_s28 }
 0xaaf   : > { %p5012_p2 = scmp.lt.u32.totalorder %s5010_s18, %s5006_s29  ;;  %p5014_p4 = scmp.lt.u32.totalorder %s5006_s29, %s6241_s19 }
 0xab0   : > { %p5008_p9 = pnand %p5007_p5, %p6346_p7 }
 0xab1   : > { %p5013_p3 = por %p5012_p2, %p5011_p10 }
 0xab2   : > { %p5009_p12 = pneg %p5008_p9 }
 0xab3   : > { %p5015_p8 = por %p5014_p4, %p5013_p3 }
 0xab5   : > { %p5016_p11 = pnand %p5015_p8, %p5009_p12 }
 0xab7   : > { %5019 = shalt.err (!%p5016_p11)
}
 0xab8   : > { %4335 = dma.vmem_to_hbm [thread:$0]  (%p6346_p7), %s6243_s25, 16, %s6241_s19, %s3508_s20  }
 0xab9 PF: > { %s6347_s16 = sld [smem:[#allocation23_spill]]  ;;  %s6348_s26 = sld [smem:[#allocation20_spill]] }
 0xaba   : > { %s6349_s23 = sld [smem:[#allocation27_spill]] }
 0xabf   : > { %p4377_p13 = scmp.ge.s32.totalorder %s6347_s16, 2  ;;  %s3532_s24 = sand.u32 1, %s6348_s26  }
 0xac0   : > { %p6350_p0 = scmp.ne.s32.totalorder %s6349_s23, 0  ;;  %s3533_s14 = scalar_lea.sflag [#allocation4], %s3532_s24 }
 0xac2   : > { %p4360_p1 = pnand %p4377_p13, %p6350_p0 }
 0xac4   : > { %5053 = dma.done.wait (!%p4360_p1), %s3533_s14, 16  }
 0xac5   : > { %5055 = vsyncadd (!%p4360_p1), %s3533_s14, 4294967280  ;;  %s6351_s21 = sld [smem:[#allocation24_spill]]  ;;  %s6352_s18 = sld [smem:[#allocation21_spill]] }
 0xac6   : > { %s6353_s19 = sld [smem:[#allocation22_spill]]  ;;  %s6354_s20 = sld [smem:[#allocation25_spill]] }
 0xacb   : > { %p29_p6 = scmp.ge.s32.totalorder %s6351_s21, 4  }
 0xacd   :  { %31 = sbr.rel (!%p29_p6) target bundleno = 13 (0xd), region = 144 }
 0xad4   :  { %3537 = vsyncpa [#allocation3], 1 }
 0xad5   :  { %3539 = vsyncpa [#allocation3 + $0x1], 1 }
 0xad6   :  { %3540 = vsyncpa [#allocation6], 1 }
 0xad7   :  { %3541 = vsyncpa [#allocation9], 1 }
 0xad8   :  { %3542 = vsyncpa [#allocation12], 1 }
 0xad9   :  { %3543 = vsyncpa [#allocation4], 1 }
 0xada   :  { %3545 = vsyncpa [#allocation4 + $0x1], 1 }

</bundles_post_ra>
